<compile_context>
chip_gen: v5e
topology: v5e:2x2
jax: 0.10.0
libtpu: 0.0.40
codegen_flags: <defaults>
</compile_context>

<pallas_src>
from math import sqrt

import jax
import jax.numpy as jnp
from jax.experimental import pallas as pl
from jax.experimental.pallas import tpu as pltpu


# ---------------------------------------------------------------------------
# Small helpers
# ---------------------------------------------------------------------------
def _round_up(x, m):
    return (x + m - 1) // m * m


def _vmem_capacity_bytes():
    try:
        cap = getattr(pltpu.get_tpu_info(), "vmem_capacity_bytes", None)
        if cap:
            return int(cap)
    except Exception:
        pass
    return 64 * 1024 * 1024  # conservative per-TensorCore lower bound (v7x)


def _pick_lane_tile(n_pad, per_lane_bytes, resident_bytes, capacity):
    """Largest 128-multiple lane tile dividing n_pad that keeps the
    double-buffered activation blocks + resident operators + in-kernel f32
    accumulator inside a generation-aware VMEM budget.  Always >= 2 grid
    steps (so both v7x TensorCores get work); prefers an even step count."""
    small_vmem = capacity < (100 << 20)           # v7x-class (64 MiB / TC)
    frac = 0.4 if small_vmem else 0.6             # relax on 128 MiB v5e/v6e
    hard_cap = 1024 if small_vmem else 2048
    budget = int(frac * capacity) - resident_bytes
    if budget < 128 * per_lane_bytes:
        # TODO(synk): when resident operators exceed the budget (very large
        # configs on v7x), split the contraction over a second 'arbitrary'
        # grid axis with a VMEM f32 accumulator instead of degrading to
        # 128-lane tiles.
        budget = 128 * per_lane_bytes
    tn_cap = budget // max(per_lane_bytes, 1)
    tn_cap = min(tn_cap, hard_cap, n_pad)
    if n_pad >= 256:
        tn_cap = min(tn_cap, n_pad // 2)          # >= 2 grid steps (megacore)
    tn_cap = max(128, int(tn_cap) - int(tn_cap) % 128)

    best_any = best_even = None
    for cand in range(tn_cap, 127, -128):
        if n_pad % cand:
            continue
        if best_any is None:
            best_any = cand
        if (n_pad // cand) % 2 == 0 and best_even is None:
            best_even = cand
        if best_any is not None and best_even is not None:
            break
    if best_any is None:
        return 128
    if best_even is not None and 2 * best_even >= best_any:
        return best_even
    return best_any


def _activate(y, act):
    if act == "relu":
        return jnp.maximum(y, 0.0)
    if act == "softplus":  # numerically stable softplus == torch.nn.Softplus
        return jnp.maximum(y, 0.0) + jnp.log(1.0 + jnp.exp(-jnp.abs(y)))
    return y


def _pad2(a, rows_to, cols_to):
    r, c = a.shape
    assert rows_to >= r and cols_to >= c
    if rows_to == r and cols_to == c:
        return a
    return jnp.pad(a, ((0, rows_to - r), (0, cols_to - c)))


def _pad_rows(x, rows_to):
    r = x.shape[0]
    if rows_to == r:
        return x
    return jnp.pad(x, ((0, rows_to - r), (0, 0)))


# ---------------------------------------------------------------------------
# Fused conv-chain Pallas kernel (one Block, or last Block + head)
# ---------------------------------------------------------------------------
def _make_chain_kernel(n_layers, n_first_inputs, acts):
    """Ref order: [A_0^0..A_0^{n_first-1}, b_0, A_1, b_1, ..., A_{L-1}, b_{L-1},
                   x_0..x_{n_first-1}, out]."""

    def kernel(*refs):
        pos = 0
        A0 = refs[pos:pos + n_first_inputs]
        pos += n_first_inputs
        b0 = refs[pos]
        pos += 1
        tail = []
        for _ in range(n_layers - 1):
            tail.append((refs[pos], refs[pos + 1]))
            pos += 2
        xs = refs[pos:pos + n_first_inputs]
        pos += n_first_inputs
        o_ref = refs[pos]

        # Layer 0 (optionally fused skip-concat: two operators, one accumulator)
        acc = jnp.dot(A0[0][...], xs[0][...], preferred_element_type=jnp.float32)
        for t in range(1, n_first_inputs):
            acc = acc + jnp.dot(A0[t][...], xs[t][...],
                                preferred_element_type=jnp.float32)
        acc = _activate(acc + b0[...], acts[0])

        # Remaining layers: intermediates stay on-chip (never written to HBM).
        for j, (A_ref, b_ref) in enumerate(tail, start=1):
            acc = jnp.dot(A_ref[...], acc.astype(A_ref.dtype),
                          preferred_element_type=jnp.float32)
            acc = _activate(acc + b_ref[...], acts[j])

        o_ref[...] = acc.astype(o_ref.dtype)

    return kernel


_PARAM_BUFFERED_OK = None   # cache: does this JAX accept pipeline_mode=Buffered(1)?


def run_fused_chain(inputs, layers, *, out_dtype, compute_dtype=jnp.bfloat16):
    """Run a fused conv chain.

    inputs : list of (R_i, N) arrays (same N, rows already 128-padded to match
             the corresponding layer-0 operator columns).
    layers : list of dicts {"A": [ops...], "b": (rows,1), "act": str};
             layer 0 may have one operator per input, later layers exactly one.
    """
    global _PARAM_BUFFERED_OK

    n_first = len(layers[0]["A"])
    assert len(inputs) == n_first
    for l in layers[1:]:
        assert len(l["A"]) == 1
    for x, A in zip(inputs, layers[0]["A"]):
        assert x.shape[0] == A.shape[1], (x.shape, A.shape)

    N = inputs[0].shape[1]
    for x in inputs:
        assert x.shape[1] == N

    out_rows = layers[-1]["A"][0].shape[0]
    itemsize_in = jnp.dtype(compute_dtype).itemsize
    itemsize_out = jnp.dtype(out_dtype).itemsize

    # Lane axis: pad to a 128-multiple and force >= 2 grid steps; skip the pad
    # (and the trailing slice) entirely when N is already aligned.
    n_pad = max(_round_up(N, 128), 256)
    if n_pad != N:
        padded = [jnp.pad(x.astype(compute_dtype), ((0, 0), (0, n_pad - N)))
                  for x in inputs]
    else:
        padded = [x.astype(compute_dtype) for x in inputs]   # no-op if already bf16

    # VMEM accounting per lane of the tile:
    #   double-buffered activation inputs + output blocks,
    #   in-kernel f32 accumulator + bf16 cast copy of the previous activation.
    io_per_lane = 2 * (sum(x.shape[0] for x in padded) * itemsize_in
                       + out_rows * itemsize_out)
    acc_per_lane, prev_rows = 0, 0
    for j, l in enumerate(layers):
        rows_j = l["A"][0].shape[0]
        acc_per_lane = max(acc_per_lane,
                           rows_j * 4 + (prev_rows * itemsize_in if j else 0))
        prev_rows = rows_j
    per_lane = io_per_lane + acc_per_lane
    param_bytes = sum(int(a.size) * a.dtype.itemsize
                      for l in layers for a in list(l["A"]) + [l["b"]])

    capacity = _vmem_capacity_bytes()
    small_vmem = capacity < (100 << 20)
    tn = _pick_lane_tile(n_pad, per_lane, param_bytes, capacity)
    grid = (n_pad // tn,)

    vmem_needed = 2 * param_bytes + per_lane * tn + (16 << 20)  # + Mosaic scratch
    vmem_limit = min(int((0.75 if small_vmem else 0.85) * capacity),
                     max(vmem_needed, 32 << 20))

    params_arrays = []
    for l in layers:
        params_arrays.extend(l["A"])
        params_arrays.append(l["b"])

    acts = tuple(l["act"] for l in layers)
    kernel = _make_chain_kernel(len(layers), n_first, acts)

    def build(buffer_params_once):
        # Operators/biases are grid-invariant (fetched once); request a single
        # buffer so they are not double-buffered in VMEM.
        pkw = {"pipeline_mode": pl.Buffered(1)} if buffer_params_once else {}
        params_specs = []
        for l in layers:
            for A in l["A"]:
                params_specs.append(pl.BlockSpec(A.shape, lambda n: (0, 0), **pkw))
            params_specs.append(pl.BlockSpec(l["b"].shape, lambda n: (0, 0), **pkw))
        in_specs = params_specs + [pl.BlockSpec((x.shape[0], tn), lambda n: (0, n))
                                   for x in padded]
        out_spec = pl.BlockSpec((out_rows, tn), lambda n: (0, n))
        return pl.pallas_call(
            kernel,
            out_shape=jax.ShapeDtypeStruct((out_rows, n_pad), out_dtype),
            grid_spec=pltpu.PrefetchScalarGridSpec(
                num_scalar_prefetch=0,
                grid=grid,
                in_specs=in_specs,
                out_specs=out_spec,
            ),
            compiler_params=pltpu.CompilerParams(
                dimension_semantics=("parallel",),
                vmem_limit_bytes=vmem_limit,
            ),
        )

    attempts = ([True, False] if _PARAM_BUFFERED_OK is None
                else [_PARAM_BUFFERED_OK])
    out, last_err = None, None
    for use_buf in attempts:
        try:
            out = build(use_buf)(*params_arrays, *padded)
        except Exception as err:      # Buffered(1) unsupported -> default pipelining
            last_err = err
            continue
        _PARAM_BUFFERED_OK = use_buf
        break
    if out is None:
        raise last_err
    return out[:, :N] if n_pad != N else out


# ---------------------------------------------------------------------------
# Operator folding (Chebyshev polynomials x weights, spherical unpool, concat)
# ---------------------------------------------------------------------------
def cheb_operator(lap, W):
    """A[(o,v),(c,u)] = sum_k W[o,k,c] * T_k(lap)[v,u], shape (Cout*V, Cin*V)."""
    Cout, K, Cin = W.shape
    V = lap.shape[0]
    lap = lap.astype(jnp.float32)
    Tk = jnp.eye(V, dtype=jnp.float32)
    A = jnp.kron(W[:, 0, :].astype(jnp.float32), Tk)
    if K > 1:
        Tkm1, Tk = Tk, lap
        A = A + jnp.kron(W[:, 1, :].astype(jnp.float32), Tk)
        for k in range(2, K):
            Tkm1, Tk = Tk, 2.0 * lap @ Tk - Tkm1
            A = A + jnp.kron(W[:, k, :].astype(jnp.float32), Tk)
    return A


def fold_sph_unpool(A_cols, Cin, V_fine):
    """Fold a parent-copy spherical unpool (V_fine = 4*V_coarse) into the
    operator's input side: sum the 4 child columns of each coarse vertex."""
    rows = A_cols.shape[0]
    Vc = V_fine // 4
    return A_cols.reshape(rows, Cin, Vc, 4).sum(axis=-1).reshape(rows, Cin * Vc)


def prepare_decoder(params, laps, *, compute_dtype=jnp.bfloat16,
                    head_dtype=jnp.float32):
    """Fold weights + Chebyshev polynomials + spherical unpool + skip-concat
    structure into per-block lists of dense operators for the fused kernels.
    Both operator dimensions are zero-padded to multiples of 128; the zero
    rows/columns propagate zeros through the ReLU chains and the padding is
    sliced off once at the very end of the decoder."""
    D = len(laps)
    for i in range(1, D):
        assert laps[i].shape[0] == 4 * laps[i - 1].shape[0]

    chains = []
    prev_rows_pad = None     # padded row count of the previous block's output
    for i, block in enumerate(params["blocks"]):
        lap = laps[i]
        V = lap.shape[0]
        layers = []
        cur_rows_pad = None  # padded row count of the running activation
        for j, p in enumerate(block):
            W, b = p["W"], p["b"]
            Cout, K, Cin = W.shape
            A = cheb_operator(lap, W)                     # (Cout*V, Cin*V) f32
            rows = Cout * V
            rows_pad = _round_up(rows, 128)
            bias = _pad_rows(jnp.repeat(b, V).reshape(rows, 1),
                             rows_pad).astype(jnp.float32)
            if j == 0 and i > 0:
                # Fused skip connection: columns split into [unpooled x | enc];
                # the spherical parent-copy unpool is folded into the x part,
                # whose columns are padded to match the previous block's
                # (already padded) output rows.
                Cx = Cin // 2
                A_x = fold_sph_unpool(A[:, :Cx * V], Cx, V)
                A_e = A[:, Cx * V:]
                A_list = [
                    _pad2(A_x, rows_pad, prev_rows_pad).astype(compute_dtype),
                    _pad2(A_e, rows_pad,
                          _round_up(A_e.shape[1], 128)).astype(compute_dtype),
                ]
            else:
                cols_pad = (_round_up(A.shape[1], 128) if j == 0 else cur_rows_pad)
                A_list = [_pad2(A, rows_pad, cols_pad).astype(compute_dtype)]
            layers.append({"A": A_list, "b": bias, "act": "relu"})
            cur_rows_pad = rows_pad
        if i == D - 1:
            # Fuse BlockHead (keepSphericalDim=True) + Softplus into the last
            # call.  Head operator kept in f32 (tiny; final-layer precision).
            W, b = params["head"]["W"], params["head"]["b"]
            Cout, K, Cin = W.shape
            A = cheb_operator(lap, W)
            rows = Cout * V
            rows_pad = _round_up(rows, 128)
            bias = _pad_rows(jnp.repeat(b, V).reshape(rows, 1),
                             rows_pad).astype(jnp.float32)
            layers.append({"A": [_pad2(A, rows_pad, cur_rows_pad).astype(head_dtype)],
                           "b": bias, "act": "softplus"})
            cur_rows_pad = rows_pad
        chains.append(layers)
        prev_rows_pad = cur_rows_pad
    return chains


# ---------------------------------------------------------------------------
# Parameter construction (deterministic, synthetic)
# ---------------------------------------------------------------------------
def init_conv_params(key, c_in, c_out, K):
    scale = 1.0 / sqrt(c_in * K)
    W = scale * jax.random.normal(key, (c_out, K, c_in), dtype=jnp.float32)
    b = 0.01 * jnp.ones((c_out,), jnp.float32)
    return {"W": W, "b": b}


def init_block_params(key, channels, K):
    keys = jax.random.split(key, len(channels) - 1)
    return [init_conv_params(k, ci, co, K)
            for k, ci, co in zip(keys, channels[:-1], channels[1:])]


def init_decoder(key, out_channels, filter_start, in_depth, K, n_levels):
    D = n_levels
    assert D > 1
    fs = filter_start
    keys = jax.random.split(key, D + 1)
    blocks = []
    ch0 = [2 ** (D - 2) * fs] + [2 ** (D - 1) * fs] * in_depth + [2 ** (D - 2) * fs]
    blocks.append(init_block_params(keys[0], ch0, K))
    for i in range(1, D - 1):
        chi = ([2 ** (D - i) * fs] + [2 ** (D - i - 1) * fs] * in_depth
               + [2 ** (D - i - 2) * fs])
        blocks.append(init_block_params(keys[i], chi, K))
    chl = [2 * fs] + [fs] * in_depth + [fs]
    blocks.append(init_block_params(keys[D - 1], chl, K))
    head = init_conv_params(keys[D], fs, out_channels, K)
    return {"blocks": blocks, "head": head}


# ---------------------------------------------------------------------------
# Layout glue + spatial unpooling (plain JAX)
# ---------------------------------------------------------------------------
def to_flat(x, dtype=None):
    # [B, C, V, X, Y, Z] -> (C*V, B*X*Y*Z)  (channel-major rows, voxels on lanes)
    B, C, V, X, Y, Z = x.shape
    if dtype is not None:
        x = x.astype(dtype)          # cast fuses into the (required) transpose
    flat = jnp.transpose(x, (1, 2, 0, 3, 4, 5)).reshape(C * V, B * X * Y * Z)
    return flat, (B, X, Y, Z)


def from_flat(flat, C, V, spatial):
    B, X, Y, Z = spatial
    return jnp.transpose(flat.reshape(C, V, B, X, Y, Z), (2, 0, 1, 3, 4, 5))


def spatial_unpool(h, spatial):
    # TODO(synk): the reference uses index-based max-unpooling
    # (pool.unpooling(x, indiceSpa, indiceSph)); the custom pooling class is not
    # available, so nearest-neighbour spatial unpooling (x2 per axis) is used.
    # The spherical parent-copy unpool is folded into the following block's
    # first-conv operator, so no 4x vertex-upsampled tensor is materialized.
    # TODO(synk): fusing this x8 lane-repeat into the next block's kernel
    # (child-contiguous fine ordering + coarse-tile BlockSpec) would remove one
    # fine-resolution HBM round trip per level but needs a Mosaic-friendly
    # in-VMEM lane interleave; kept in the wrapper (bf16) for robustness.
    B, X, Y, Z = spatial
    R = h.shape[0]
    h6 = h.reshape(R, B, X, Y, Z)
    h6 = jnp.repeat(jnp.repeat(jnp.repeat(h6, 2, axis=2), 2, axis=3), 2, axis=4)
    return h6.reshape(R, B * 8 * X * Y * Z), (B, 2 * X, 2 * Y, 2 * Z)


# ---------------------------------------------------------------------------
# Decoder forward (mirrors Decoder.forward)
# ---------------------------------------------------------------------------
def decoder_forward(chains, laps, x, encoder_features, indiceSpa, indiceSph,
                    out_channels, *, compute_dtype=jnp.bfloat16):
    del indiceSpa, indiceSph   # see TODO in spatial_unpool
    D = len(chains)
    h, spatial = to_flat(x, compute_dtype)
    h = _pad_rows(h, chains[0][0]["A"][0].shape[1])
    h = run_fused_chain([h], chains[0], out_dtype=compute_dtype,
                        compute_dtype=compute_dtype)
    for i in range(1, D):
        h, spatial = spatial_unpool(h, spatial)
        enc, _ = to_flat(encoder_features[-i], compute_dtype)  # one cast+transpose
        enc = _pad_rows(enc, chains[i][0]["A"][1].shape[1])
        is_last = i == D - 1
        h = run_fused_chain([h, enc], chains[i],
                            out_dtype=jnp.float32 if is_last else compute_dtype,
                            compute_dtype=compute_dtype)
    V = laps[-1].shape[0]
    return from_flat(h[:out_channels * V], out_channels, V, spatial)


def decoder_reference(chains_f32, laps, x, encoder_features, out_channels):
    """Pure-JAX f32 reference of the identical folded-operator math."""
    def run_chain(inputs, layers):
        acc = layers[0]["A"][0] @ inputs[0]
        for t in range(1, len(inputs)):
            acc = acc + layers[0]["A"][t] @ inputs[t]
        acc = _activate(acc + layers[0]["b"], layers[0]["act"])
        for l in layers[1:]:
            acc = _activate(l["A"][0] @ acc + l["b"], l["act"])
        return acc

    h, spatial = to_flat(x, jnp.float32)
    h = _pad_rows(h, chains_f32[0][0]["A"][0].shape[1])
    h = run_chain([h], chains_f32[0])
    for i in range(1, len(chains_f32)):
        h, spatial = spatial_unpool(h, spatial)
        enc, _ = to_flat(encoder_features[-i], jnp.float32)
        enc = _pad_rows(enc, chains_f32[i][0]["A"][1].shape[1])
        h = run_chain([h, enc], chains_f32[i])
    V = laps[-1].shape[0]
    return from_flat(h[:out_channels * V], out_channels, V, spatial)


# ---------------------------------------------------------------------------
# Deterministic synthetic inputs
# ---------------------------------------------------------------------------
def make_laplacian(V):
    # ring-graph normalized Laplacian, rescaled to ~[-1, 1] (lambda_max <= 2)
    idx = jnp.arange(V)
    A = jnp.zeros((V, V), jnp.float32)
    A = A.at[idx, (idx + 1) % V].set(1.0)
    A = A.at[(idx + 1) % V, idx].set(1.0)
    d_inv_sqrt = 1.0 / jnp.sqrt(jnp.sum(A, axis=1))
    Lnorm = jnp.eye(V, dtype=jnp.float32) - d_inv_sqrt[:, None] * A * d_inv_sqrt[None, :]
    return Lnorm - jnp.eye(V, dtype=jnp.float32)


if __name__ == "__main__":
    key = jax.random.PRNGKey(0)
    B = 1
    out_channels = 3
    filter_start = 8
    in_depth = 1
    K = 3                     # kernel_sizeSph (Chebyshev order + 1)
    # kernel_sizeSpa = 1  (1x1x1 spatial kernel, see header assumptions)
    D = 2                     # number of laplacian levels
    V0, V1 = 12, 48           # spherical vertices per level (x4 per level)
    X0 = Y0 = Z0 = 4

    laps = [make_laplacian(V0), make_laplacian(V1)]

    pkey, xkey, ekey = jax.random.split(key, 3)
    params = init_decoder(pkey, out_channels, filter_start, in_depth, K, D)
    chains = prepare_decoder(params, laps, compute_dtype=jnp.bfloat16)
    chains_f32 = prepare_decoder(params, laps, compute_dtype=jnp.float32)

    # x: [B, 2**(D-2)*fs, V_encoded_(D-1), X, Y, Z]
    x = jax.random.normal(xkey, (B, filter_start, V0, X0, Y0, Z0), dtype=jnp.float32)
    # encoder_features[i]: [B, 2**i * fs, V_encoded_i, X, Y, Z]
    encoder_features = [
        jax.random.normal(ekey, (B, filter_start, V1, 2 * X0, 2 * Y0, 2 * Z0),
                          dtype=jnp.float32)
    ]
    # dummy pooling indices (signature parity; see TODO in spatial_unpool)
    indiceSpa = [jnp.zeros((B, filter_start, V0, X0, Y0, Z0), jnp.int32)]
    indiceSph = [jnp.zeros((B, filter_start, V0, X0, Y0, Z0), jnp.int32)]

    out = decoder_forward(chains, laps, x, encoder_features,
                          indiceSpa, indiceSph, out_channels)
    out = jax.block_until_ready(out)

    expected_shape = (B, out_channels, V1, 2 * X0, 2 * Y0, 2 * Z0)
    assert out.shape == expected_shape, (out.shape, expected_shape)
    assert bool(jnp.all(jnp.isfinite(out)))
    assert bool(jnp.all(out >= 0.0))   # Softplus output is non-negative

    # Validate the fused bf16 Pallas path against the pure-JAX f32 reference of
    # the identical folded-operator math (relative tolerance: bf16 MXU path).
    ref = decoder_reference(chains_f32, laps, x, encoder_features, out_channels)
    err = float(jnp.max(jnp.abs(out - ref)))
    tol = 0.1 * max(1.0, float(jnp.max(jnp.abs(ref))))
    assert err < tol, (err, tol)

    print("KERNEL_OK")
</pallas_src>

<mosaic_0001>
module attributes {stable_mosaic.version = 11 : i64} {
  func.func @kernel(%arg0: i32, %arg1: memref<256x128xbf16, #tpu.memory_space<vmem>>, %arg2: memref<256x1xf32, #tpu.memory_space<vmem>>, %arg3: memref<128x256xbf16, #tpu.memory_space<vmem>>, %arg4: memref<128x1xf32, #tpu.memory_space<vmem>>, %arg5: memref<128x128xbf16, #tpu.memory_space<vmem>>, %arg6: memref<128x128xbf16, #tpu.memory_space<vmem>>) attributes {dimension_semantics = [#tpu.dimension_semantics<parallel>], iteration_bounds = array<i64: 2>, scalar_prefetch = 0 : i64, scratch_operands = 0 : i64, tpu.core_type = #tpu.core_type<tc>, window_params = [{pipeline_mode = #tpu.pipeline_mode<synchronous>, transform_indices = @transform_0, window_bounds = array<i64: 256, 128>}, {pipeline_mode = #tpu.pipeline_mode<synchronous>, transform_indices = @transform_1, window_bounds = array<i64: 256, 1>}, {pipeline_mode = #tpu.pipeline_mode<synchronous>, transform_indices = @transform_2, window_bounds = array<i64: 128, 256>}, {pipeline_mode = #tpu.pipeline_mode<synchronous>, transform_indices = @transform_3, window_bounds = array<i64: 128, 1>}, {transform_indices = @transform_4, window_bounds = array<i64: 128, 128>}, {transform_indices = @transform_5, window_bounds = array<i64: 128, 128>}]} {
    %c0 = arith.constant 0 : index
    %c0_0 = arith.constant 0 : index
    %0 = vector.load %arg1[%c0, %c0_0] : memref<256x128xbf16, #tpu.memory_space<vmem>>, vector<256x128xbf16>
    %c0_1 = arith.constant 0 : index
    %c0_2 = arith.constant 0 : index
    %1 = vector.load %arg5[%c0_1, %c0_2] : memref<128x128xbf16, #tpu.memory_space<vmem>>, vector<128x128xbf16>
    %cst = arith.constant dense<0.000000e+00> : vector<256x128xf32>
    %2 = tpu.matmul %0, %1, %cst {dimension_numbers = #tpu.dot_dimension_numbers<[1], [0], [0], [1], [0, 0, 1, 1], [], []>} : vector<256x128xbf16>, vector<128x128xbf16>, vector<256x128xf32> -> vector<256x128xf32>
    %c0_3 = arith.constant 0 : index
    %c0_4 = arith.constant 0 : index
    %3 = vector.load %arg2[%c0_3, %c0_4] : memref<256x1xf32, #tpu.memory_space<vmem>>, vector<256x1xf32>
    %4 = vector.broadcast %3 : vector<256x1xf32> to vector<256x128xf32>
    %5 = arith.addf %2, %4 : vector<256x128xf32>
    %cst_5 = arith.constant 0.000000e+00 : f32
    %6 = vector.broadcast %cst_5 : f32 to vector<256x128xf32>
    %7 = arith.maximumf %5, %6 : vector<256x128xf32>
    %c0_6 = arith.constant 0 : index
    %c0_7 = arith.constant 0 : index
    %8 = vector.load %arg3[%c0_6, %c0_7] : memref<128x256xbf16, #tpu.memory_space<vmem>>, vector<128x256xbf16>
    %9 = arith.truncf %7 : vector<256x128xf32> to vector<256x128xbf16>
    %cst_8 = arith.constant dense<0.000000e+00> : vector<128x128xf32>
    %10 = tpu.matmul %8, %9, %cst_8 {dimension_numbers = #tpu.dot_dimension_numbers<[1], [0], [0], [1], [0, 0, 1, 1], [], []>} : vector<128x256xbf16>, vector<256x128xbf16>, vector<128x128xf32> -> vector<128x128xf32>
    %c0_9 = arith.constant 0 : index
    %c0_10 = arith.constant 0 : index
    %11 = vector.load %arg4[%c0_9, %c0_10] : memref<128x1xf32, #tpu.memory_space<vmem>>, vector<128x1xf32>
    %12 = vector.broadcast %11 : vector<128x1xf32> to vector<128x128xf32>
    %13 = arith.addf %10, %12 : vector<128x128xf32>
    %cst_11 = arith.constant 0.000000e+00 : f32
    %14 = vector.broadcast %cst_11 : f32 to vector<128x128xf32>
    %15 = arith.maximumf %13, %14 : vector<128x128xf32>
    %16 = arith.truncf %15 : vector<128x128xf32> to vector<128x128xbf16>
    %c0_12 = arith.constant 0 : index
    %c0_13 = arith.constant 0 : index
    %17 = vector.load %arg6[%c0_12, %c0_13] : memref<128x128xbf16, #tpu.memory_space<vmem>>, vector<128x128xbf16>
    tpu.vector_store %arg6[%c0_12, %c0_13], %16 {strides = array<i32>} : memref<128x128xbf16, #tpu.memory_space<vmem>>, vector<128x128xbf16>,
    return
  }
  func.func @transform_0(%arg0: i32) -> (i32, i32) {
    %c0_i32 = arith.constant 0 : i32
    %c0_i32_0 = arith.constant 0 : i32
    %c0_i32_1 = arith.constant 0 : i32
    return %c0_i32, %c0_i32_0 : i32, i32
  }
  func.func @transform_1(%arg0: i32) -> (i32, i32) {
    %c0_i32 = arith.constant 0 : i32
    %c0_i32_0 = arith.constant 0 : i32
    %c0_i32_1 = arith.constant 0 : i32
    return %c0_i32, %c0_i32_0 : i32, i32
  }
  func.func @transform_2(%arg0: i32) -> (i32, i32) {
    %c0_i32 = arith.constant 0 : i32
    %c0_i32_0 = arith.constant 0 : i32
    %c0_i32_1 = arith.constant 0 : i32
    return %c0_i32, %c0_i32_0 : i32, i32
  }
  func.func @transform_3(%arg0: i32) -> (i32, i32) {
    %c0_i32 = arith.constant 0 : i32
    %c0_i32_0 = arith.constant 0 : i32
    %c0_i32_1 = arith.constant 0 : i32
    return %c0_i32, %c0_i32_0 : i32, i32
  }
  func.func @transform_4(%arg0: i32) -> (i32, i32) {
    %c0_i32 = arith.constant 0 : i32
    %c0_i32_0 = arith.constant 0 : i32
    return %c0_i32, %arg0 : i32, i32
  }
  func.func @transform_5(%arg0: i32) -> (i32, i32) {
    %c0_i32 = arith.constant 0 : i32
    %c0_i32_0 = arith.constant 0 : i32
    return %c0_i32, %arg0 : i32, i32
  }
}

module attributes {stable_mosaic.version = 11 : i64} {
  func.func @kernel(%arg0: i32, %arg1: memref<256x128xbf16, #tpu.memory_space<vmem>>, %arg2: memref<256x1xf32, #tpu.memory_space<vmem>>, %arg3: memref<128x256xbf16, #tpu.memory_space<vmem>>, %arg4: memref<128x1xf32, #tpu.memory_space<vmem>>, %arg5: memref<128x128xbf16, #tpu.memory_space<vmem>>, %arg6: memref<128x128xbf16, #tpu.memory_space<vmem>>) attributes {dimension_semantics = [#tpu.dimension_semantics<parallel>], iteration_bounds = array<i64: 2>, scalar_prefetch = 0 : i64, scratch_operands = 0 : i64, tpu.core_type = #tpu.core_type<tc>, window_params = [{pipeline_mode = #tpu.pipeline_mode<synchronous>, transform_indices = @transform_0, window_bounds = array<i64: 256, 128>}, {pipeline_mode = #tpu.pipeline_mode<synchronous>, transform_indices = @transform_1, window_bounds = array<i64: 256, 1>}, {pipeline_mode = #tpu.pipeline_mode<synchronous>, transform_indices = @transform_2, window_bounds = array<i64: 128, 256>}, {pipeline_mode = #tpu.pipeline_mode<synchronous>, transform_indices = @transform_3, window_bounds = array<i64: 128, 1>}, {transform_indices = @transform_4, window_bounds = array<i64: 128, 128>}, {transform_indices = @transform_5, window_bounds = array<i64: 128, 128>}]} {
    %c0 = arith.constant 0 : index
    %c0_0 = arith.constant 0 : index
    %0 = vector.load %arg1[%c0, %c0_0] : memref<256x128xbf16, #tpu.memory_space<vmem>>, vector<256x128xbf16>
    %c0_1 = arith.constant 0 : index
    %c0_2 = arith.constant 0 : index
    %1 = vector.load %arg5[%c0_1, %c0_2] : memref<128x128xbf16, #tpu.memory_space<vmem>>, vector<128x128xbf16>
    %cst = arith.constant dense<0.000000e+00> : vector<256x128xf32>
    %2 = tpu.matmul %0, %1, %cst {dimension_numbers = #tpu.dot_dimension_numbers<[1], [0], [0], [1], [0, 0, 1, 1], [], []>} : vector<256x128xbf16>, vector<128x128xbf16>, vector<256x128xf32> -> vector<256x128xf32>
    %c0_3 = arith.constant 0 : index
    %c0_4 = arith.constant 0 : index
    %3 = vector.load %arg2[%c0_3, %c0_4] : memref<256x1xf32, #tpu.memory_space<vmem>>, vector<256x1xf32>
    %4 = vector.broadcast %3 : vector<256x1xf32> to vector<256x128xf32>
    %5 = arith.addf %2, %4 : vector<256x128xf32>
    %cst_5 = arith.constant 0.000000e+00 : f32
    %6 = vector.broadcast %cst_5 : f32 to vector<256x128xf32>
    %7 = arith.maximumf %5, %6 : vector<256x128xf32>
    %c0_6 = arith.constant 0 : index
    %c0_7 = arith.constant 0 : index
    %8 = vector.load %arg3[%c0_6, %c0_7] : memref<128x256xbf16, #tpu.memory_space<vmem>>, vector<128x256xbf16>
    %9 = arith.truncf %7 : vector<256x128xf32> to vector<256x128xbf16>
    %cst_8 = arith.constant dense<0.000000e+00> : vector<128x128xf32>
    %10 = tpu.matmul %8, %9, %cst_8 {dimension_numbers = #tpu.dot_dimension_numbers<[1], [0], [0], [1], [0, 0, 1, 1], [], []>} : vector<128x256xbf16>, vector<256x128xbf16>, vector<128x128xf32> -> vector<128x128xf32>
    %c0_9 = arith.constant 0 : index
    %c0_10 = arith.constant 0 : index
    %11 = vector.load %arg4[%c0_9, %c0_10] : memref<128x1xf32, #tpu.memory_space<vmem>>, vector<128x1xf32>
    %12 = vector.broadcast %11 : vector<128x1xf32> to vector<128x128xf32>
    %13 = arith.addf %10, %12 : vector<128x128xf32>
    %cst_11 = arith.constant 0.000000e+00 : f32
    %14 = vector.broadcast %cst_11 : f32 to vector<128x128xf32>
    %15 = arith.maximumf %13, %14 : vector<128x128xf32>
    %16 = arith.truncf %15 : vector<128x128xf32> to vector<128x128xbf16>
    %c0_12 = arith.constant 0 : index
    %c0_13 = arith.constant 0 : index
    %17 = vector.load %arg6[%c0_12, %c0_13] : memref<128x128xbf16, #tpu.memory_space<vmem>>, vector<128x128xbf16>
    tpu.vector_store %arg6[%c0_12, %c0_13], %16 {strides = array<i32>} : memref<128x128xbf16, #tpu.memory_space<vmem>>, vector<128x128xbf16>,
    return
  }
  func.func @transform_0(%arg0: i32) -> (i32, i32) {
    %c0_i32 = arith.constant 0 : i32
    %c0_i32_0 = arith.constant 0 : i32
    %c0_i32_1 = arith.constant 0 : i32
    return %c0_i32, %c0_i32_0 : i32, i32
  }
  func.func @transform_1(%arg0: i32) -> (i32, i32) {
    %c0_i32 = arith.constant 0 : i32
    %c0_i32_0 = arith.constant 0 : i32
    %c0_i32_1 = arith.constant 0 : i32
    return %c0_i32, %c0_i32_0 : i32, i32
  }
  func.func @transform_2(%arg0: i32) -> (i32, i32) {
    %c0_i32 = arith.constant 0 : i32
    %c0_i32_0 = arith.constant 0 : i32
    %c0_i32_1 = arith.constant 0 : i32
    return %c0_i32, %c0_i32_0 : i32, i32
  }
  func.func @transform_3(%arg0: i32) -> (i32, i32) {
    %c0_i32 = arith.constant 0 : i32
    %c0_i32_0 = arith.constant 0 : i32
    %c0_i32_1 = arith.constant 0 : i32
    return %c0_i32, %c0_i32_0 : i32, i32
  }
  func.func @transform_4(%arg0: i32) -> (i32, i32) {
    %c0_i32 = arith.constant 0 : i32
    %c0_i32_0 = arith.constant 0 : i32
    return %c0_i32, %arg0 : i32, i32
  }
  func.func @transform_5(%arg0: i32) -> (i32, i32) {
    %c0_i32 = arith.constant 0 : i32
    %c0_i32_0 = arith.constant 0 : i32
    return %c0_i32, %arg0 : i32, i32
  }
}

</mosaic_0001>

<bundles_post_ra>
// kernel: tpu_custom_call.1
= control target key start
LH: loop header
LB: loop body
LE: loop exit
PB: predicated region body
PF: predicated region fallthrough
CT: control target
= control target key end

     0   :  { %10 = vsyncpa [#allocation4], 0  ;;  %s2182_s0 = inlined_call_operand.vmem [shape: bf16[256,128], index: 0, kind: input, shape index: {}]   ;;  %s2183_s1 = inlined_call_operand.vmem [shape: f32[256,1], index: 1, kind: input, shape index: {}]   ;;  %s2184_s2 = inlined_call_operand.vmem [shape: bf16[128,256], index: 2, kind: input, shape index: {}]   ;;  %s2185_s3 = inlined_call_operand.vmem [shape: f32[128,1], index: 3, kind: input, shape index: {}]   ;;  %s2186_s4 = inlined_call_operand.vmem [shape: bf16[128,256], index: 4, kind: input, shape index: {}]   ;;  %s2187_s5 = inlined_call_operand.hbm [shape: bf16[128,256], index: 5, kind: output, shape index: {}]  }
   0x1   :  { %12 = vsyncpa [#allocation4 + $0x1], 0  ;;  %s1679_s18 = smov 0   ;;  %s1681_s19 = smov 0  }
   0x2   :  { %s1683_s20 = smov 0   ;;  %s1685_s21 = smov 0  }
   0x3 LB: > { %s1267_s22 = sadd.s32 4294967295, %s1643_s21   ;;  %s1268_s23 = sadd.s32 4294967294, %s1643_s21   ;;  %s1643_s21 = sphi %s1685_s21, %s2193_s21   ;;  %s1639_s20 = sphi %s1683_s20, %s2192_s20   ;;  %s1635_s19 = sphi %s1681_s19, %s2191_s19   ;;  %s1631_s18 = sphi %s1679_s18, %s2190_s18  }
   0x4   : > { %s1702_s24 = sadd.s32 1, %s1643_s21   ;;  %s109_s25 = sadd.s32 1, %s1639_s20 }
   0x5   : > { %s106_s26 = ssub.s32 %s1643_s21, %s1702_s24  ;;  %p116_p0 = scmp.ne.s32.totalorder %s1639_s20, %s1635_s19 }
   0x6   : > { %p107_p1 = scmp.eq.s32.totalorder %s106_s26, 0  ;;  %p117_p2 = scmp.eq.s32.totalorder %s1643_s21, 0 }
   0x7   : > { %p146_p3 = scmp.eq.s32.totalorder %s1267_s22, 1  ;;  %p151_p4 = scmp.ne.s32.totalorder %s1635_s19, %s1631_s18 }
   0x8   : > { %s1715_s27 = scalar_select %p107_p1, %s1639_s20, %s109_s25  }
   0x9   : > { %p118_p5 = por %p117_p2, %p116_p0  ;;  %p1717_p6 = por %p146_p3, %p116_p0 }
   0xa   : > { %p152_p7 = scmp.eq.s32.totalorder %s1268_s23, 1  ;;  %p1270_p9 = scmp.ge.s32.totalorder %s1643_s21, 2 }
   0xc   : > { %p1721_p8 = por %p152_p7, %p151_p4  ;;  %180 = sbr.rel (%p1270_p9) target bundleno = 37 (0x25), region = 32 }
  0x11   : > { %183 = sbr.rel (!%p118_p5) target bundleno = 37 (0x25), region = 36  ;;  %s185_s30 = sand.u32 (%p118_p5), 1, %s1639_s20  }
  0x12   : > { %s1272_s6 = sshll.u32 (%p118_p5), %s1643_s21, 2  ;;  %s1271_s7 = sshll.u32 (%p118_p5), %s185_s30, 6 }
  0x13   : > { %s1733_s10 = scalar_lea.vmem (%p118_p5), %s2186_s4, %s1272_s6  ;;  %s187_s11 = scalar_lea.vmem (%p118_p5), [#allocation2], %s1271_s7 }
  0x14   : > { %v206_v0 = vld [vmem:[%s1733_s10] sm:$0xf] (%p118_p5)  ;;  %v208_v1 = vld [vmem:[%s1733_s10 + $0x8] sm:$0xf] (%p118_p5)  ;;  %v210_v2 = vld [vmem:[%s1733_s10 + $0x10] sm:$0xf] (%p118_p5) }
  0x15   : > { %207 = vst [vmem:[%s187_s11] sm:$0xf] (%p118_p5), %v206_v0  ;;  %v212_v3 = vld [vmem:[%s1733_s10 + $0x18] sm:$0xf] (%p118_p5)  ;;  %v214_v4 = vld [vmem:[%s1733_s10 + $0x20] sm:$0xf] (%p118_p5) }
  0x16   : > { %209 = vst [vmem:[%s187_s11 + $0x4] sm:$0xf] %v208_v1  ;;  %v216_v5 = vld [vmem:[%s1733_s10 + $0x28] sm:$0xf]  ;;  %v218_v6 = vld [vmem:[%s1733_s10 + $0x30] sm:$0xf] }
  0x17   : > { %211 = vst [vmem:[%s187_s11 + $0x8] sm:$0xf] %v210_v2  ;;  %v220_v7 = vld [vmem:[%s1733_s10 + $0x38] sm:$0xf]  ;;  %v222_v8 = vld [vmem:[%s1733_s10 + $0x40] sm:$0xf] }
  0x18   : > { %213 = vst [vmem:[%s187_s11 + $0xc] sm:$0xf] %v212_v3  ;;  %v224_v9 = vld [vmem:[%s1733_s10 + $0x48] sm:$0xf]  ;;  %v226_v10 = vld [vmem:[%s1733_s10 + $0x50] sm:$0xf] }
  0x19   : > { %215 = vst [vmem:[%s187_s11 + $0x10] sm:$0xf] %v214_v4  ;;  %v228_v11 = vld [vmem:[%s1733_s10 + $0x58] sm:$0xf]  ;;  %v230_v12 = vld [vmem:[%s1733_s10 + $0x60] sm:$0xf] }
  0x1a   : > { %217 = vst [vmem:[%s187_s11 + $0x14] sm:$0xf] %v216_v5  ;;  %v232_v13 = vld [vmem:[%s1733_s10 + $0x68] sm:$0xf]  ;;  %v234_v14 = vld [vmem:[%s1733_s10 + $0x70] sm:$0xf] }
  0x1b   : > { %219 = vst [vmem:[%s187_s11 + $0x18] sm:$0xf] %v218_v6  ;;  %v236_v15 = vld [vmem:[%s1733_s10 + $0x78] sm:$0xf] }
  0x1c   : > { %221 = vst [vmem:[%s187_s11 + $0x1c] sm:$0xf] %v220_v7 }
  0x1d   : > { %223 = vst [vmem:[%s187_s11 + $0x20] sm:$0xf] %v222_v8 }
  0x1e   : > { %225 = vst [vmem:[%s187_s11 + $0x24] sm:$0xf] %v224_v9 }
  0x1f   : > { %227 = vst [vmem:[%s187_s11 + $0x28] sm:$0xf] %v226_v10 }
  0x20   : > { %229 = vst [vmem:[%s187_s11 + $0x2c] sm:$0xf] %v228_v11 }
  0x21   : > { %231 = vst [vmem:[%s187_s11 + $0x30] sm:$0xf] %v230_v12 }
  0x22   : > { %233 = vst [vmem:[%s187_s11 + $0x34] sm:$0xf] %v232_v13 }
  0x23   : > { %235 = vst [vmem:[%s187_s11 + $0x38] sm:$0xf] %v234_v14 }
  0x24   : > { %237 = vst [vmem:[%s187_s11 + $0x3c] sm:$0xf] %v236_v15 }
  0x25 PF: > { %p1273_p10 = scmp.ge.s32.totalorder %s1643_s21, 1  ;;  %p292_p11 = scmp.lt.s32.totalorder %s1643_s21, 3 }
  0x27   : > { %p293_p12 = pnand %p1273_p10, %p292_p11 }
  0x28   : > { %s299_s16 = sand.u32 (!%p293_p12), 1, %s1635_s19   ;;  %s1601_s6 = scalar_lea.hbm (!%p293_p12), %s2187_s5, 128 }
  0x29   : > { %296 = sbr.rel (%p293_p12) target bundleno = 633 (0x279), region = 77  ;;  %s1762_s17 = sshll.u32 (!%p293_p12), %s299_s16, 6 }
  0x2a   : > { %s1768_s26 = scalar_lea.vmem (!%p293_p12), [#allocation2], %s1762_s17  ;;  %s2136_s10 = scalar_lea.vmem (!%p293_p12), [#allocation3], %s1762_s17 }
  0x2b   : > { %s1437_s17 = sshll.u32 (!%p293_p12), %s1267_s22, 2  ;;  %s1197_s14 = sshll.u32 (!%p293_p12), %s2136_s10, 4  ;;  %s1198_s14 = int_to_ptr.vmem [resolvable:$true] %s1197_s14 }
  0x2c   : > { %s1196_s13 = scalar_lea.hbm (!%p293_p12), %s2187_s5, %s1437_s17  ;;  %s1186_s22 = scalar_lea.sflag (!%p293_p12), [#allocation4], %s299_s16 }
  0x2d   : > { %s1199_s15 = sshll.u32 (!%p293_p12), %s1196_s13, 4  ;;  %s1200_s15 = int_to_ptr.hbm [resolvable:$true] %s1199_s15 }
  0x2e   : > { %v404_v16 = vld [vmem:[%s2183_s1 + $0xf0] sm:$0xff]  ;;  %v1645_v18 = vmov 0   ;;  %v402_v19 = vld [vmem:[%s2183_s1 + $0xe0] sm:$0xff]  ;;  %v1463_v20 = vld [vmem:[%s1768_s26 + $0x38] sm:$0xff]  ;;  %s1595_s23 = sshra.s32 %s1200_s15, 4  ;;  %s1596_s23 = int_to_ptr.hbm [resolvable:$true] %s1595_s23 }
  0x2f   : > { %v388_v17 = vld [vmem:[%s2183_s1 + $0x70] sm:$0xff]  ;;  %1579 = vset.pattern.permute.xlu1 %v1645_v18  ;;  %1578 = vset.pattern.permute.xlu0 %v1645_v18  ;;  %v405_v22 = vld [vmem:[%s2183_s1 + $0xf8] sm:$0xff]  ;;  %v1461_v24 = vld [vmem:[%s1768_s26 + $0x28] sm:$0xff]  ;;  %s1597_s25 = scalar_lea.hbm %s1596_s23, 64  ;;  %p1602_p2 = scmp.lt.s32.totalorder %s1596_s23, %s2187_s5 }
  0x30   : > { %558 = vperm.xlu0 %1578, %v404_v16   ;;  %478 = vperm.xlu1 %1579, %v388_v17   ;;  %v1462_v21 = vld [vmem:[%s1768_s26 + $0x30] sm:$0xff]  ;;  %v389_v23 = vld [vmem:[%s2183_s1 + $0x78] sm:$0xff]  ;;  %v403_v25 = vld [vmem:[%s2183_s1 + $0xe8] sm:$0xff]  ;;  %p1598_p13 = scmp.ne.s32.totalorder %s1596_s23, %s1597_s25  ;;  %p1603_p3 = scmp.lt.s32.totalorder %s1601_s6, %s1597_s25 }
  0x31   : > { %1580 = vset.pattern.permute.xlu2 %v1645_v18  ;;  %710 = vmatpush.bf16.msra.mxu0 %v1463_v20  ;;  %v1460_v26 = vld [vmem:[%s1768_s26 + $0x20] sm:$0xff]  ;;  %v387_v27 = vld [vmem:[%s2183_s1 + $0x68] sm:$0xff]  ;;  %v1459_v29 = vld [vmem:[%s1768_s26 + $0x18] sm:$0xff] }
  0x32   : > { %548 = vperm.xlu2 %1580, %v402_v19   ;;  %1527 = vmatpush.bf16.msra.mxu3 %v1463_v20  ;;  %v386_v28 = vld [vmem:[%s2183_s1 + $0x60] sm:$0xff]  ;;  %v400_v30 = vld [vmem:[%s2183_s1 + $0xd0] sm:$0xff]  ;;  %v401_v32 = vld [vmem:[%s2183_s1 + $0xd8] sm:$0xff]  ;;  %p1599_p0 = pnand %p1598_p13, %p1717_p6  ;;  %p1604_p4 = por %p1603_p3, %p1602_p2 }
  0x33   : > { %v1458_v31 = vld [vmem:[%s1768_s26 + $0x10] sm:$0xff]  ;;  %v1457_v34 = vld [vmem:[%s1768_s26 + $0x8] sm:$0xff]  ;;  %v385_v35 = vld [vmem:[%s2183_s1 + $0x58] sm:$0xff] }
  0x34   : > { %v384_v33 = vld [vmem:[%s2183_s1 + $0x50] sm:$0xff]  ;;  %v1456_v36 = vld [vmem:[%s1768_s26] sm:$0xff]  ;;  %v399_v38 = vld [vmem:[%s2183_s1 + $0xc8] sm:$0xff]  ;;  %p1600_p1 = pneg %p1599_p0 }
  0x35   : > { %711 = vmatpush.bf16.msra.mxu0 %v1462_v21  ;;  %v398_v37 = vld [vmem:[%s2183_s1 + $0xc0] sm:$0xff]  ;;  %v396_v42 = vld [vmem:[%s2183_s1 + $0xb0] sm:$0xff]  ;;  %v383_v43 = vld [vmem:[%s2183_s1 + $0x48] sm:$0xff] }
  0x36   : > { %1528 = vmatpush.bf16.msra.mxu3 %v1462_v21  ;;  %v1440_v39 = vld [vmem:[%s2182_s0] sm:$0xff]  ;;  %v397_v44 = vld [vmem:[%s2183_s1 + $0xb8] sm:$0xff]  ;;  %v380_v46 = vld [vmem:[%s2183_s1 + $0x30] sm:$0xff]  ;;  %p1605_p5 = pnand %p1604_p4, %p1600_p1 }
  0x37   : > { %v1448_v40 = vld [vmem:[%s2182_s0 + $0x40] sm:$0xff]  ;;  %v381_v45 = vld [vmem:[%s2183_s1 + $0x38] sm:$0xff]  ;;  %v1441_v47 = vld [vmem:[%s2182_s0 + $0x8] sm:$0xff] }
  0x38   : > { %563 = vperm.xlu0 %1578, %v405_v22   ;;  %483 = vperm.xlu1 %1579, %v389_v23   ;;  %v382_v41 = vld [vmem:[%s2183_s1 + $0x40] sm:$0xff]  ;;  %v1449_v48 = vld [vmem:[%s2182_s0 + $0x48] sm:$0xff]  ;;  %v392_v53 = vld [vmem:[%s2183_s1 + $0x90] sm:$0xff] }
  0x39   : > { %712 = vmatpush.bf16.msra.mxu0 %v1461_v24  ;;  %v394_v49 = vld [vmem:[%s2183_s1 + $0xa0] sm:$0xff]  ;;  %v395_v50 = vld [vmem:[%s2183_s1 + $0xa8] sm:$0xff]  ;;  %v393_v54 = vld [vmem:[%s2183_s1 + $0x98] sm:$0xff] }
  0x3a   : > { %553 = vperm.xlu2 %1580, %v403_v25   ;;  %1529 = vmatpush.bf16.msra.mxu3 %v1461_v24  ;;  %v378_v51 = vld [vmem:[%s2183_s1 + $0x20] sm:$0xff]  ;;  %v379_v52 = vld [vmem:[%s2183_s1 + $0x28] sm:$0xff]  ;;  %v1442_v55 = vld [vmem:[%s2182_s0 + $0x10] sm:$0xff] }
  0x3b   : > { %v1450_v56 = vld [vmem:[%s2182_s0 + $0x50] sm:$0xff]  ;;  %v390_v58 = vld [vmem:[%s2183_s1 + $0x80] sm:$0xff]  ;;  %v377_v59 = vld [vmem:[%s2183_s1 + $0x18] sm:$0xff] }
  0x3c   : > { %v376_v57 = vld [vmem:[%s2183_s1 + $0x10] sm:$0xff]  ;;  %v391_v60 = vld [vmem:[%s2183_s1 + $0x88] sm:$0xff]  ;;  %v374_v62 = vld [vmem:[%s2183_s1] sm:$0xff] }
  0x3d   : > { %713 = vmatpush.bf16.msra.mxu0 %v1460_v26  ;;  %v375_v61 = vld [vmem:[%s2183_s1 + $0x8] sm:$0xff]  ;;  %v1443_v63 = vld [vmem:[%s2182_s0 + $0x18] sm:$0xff]  ;;  %v863_v1 = vld [vmem:[%s2185_s3] sm:$0xff] }
  0x3e   : > { %1530 = vmatpush.bf16.msra.mxu3 %v1460_v26  ;;  %v1451_v0 = vld [vmem:[%s2182_s0 + $0x58] sm:$0xff]  ;;  %v865_v2 = vld [vmem:[%s2185_s3 + $0x10] sm:$0xff]  ;;  %v864_v3 = vld [vmem:[%s2185_s3 + $0x8] sm:$0xff] }
  0x3f   : > { %v866_v4 = vld [vmem:[%s2185_s3 + $0x18] sm:$0xff]  ;;  %v868_v6 = vld [vmem:[%s2185_s3 + $0x28] sm:$0xff]  ;;  %v867_v7 = vld [vmem:[%s2185_s3 + $0x20] sm:$0xff] }
  0x40   : > { %473 = vperm.xlu1 %1579, %v387_v27   ;;  %468 = vperm.xlu0 %1578, %v386_v28   ;;  %v1444_v8 = vld [vmem:[%s2182_s0 + $0x20] sm:$0xff]  ;;  %v869_v10 = vld [vmem:[%s2185_s3 + $0x30] sm:$0xff]  ;;  %v870_v12 = vld [vmem:[%s2185_s3 + $0x38] sm:$0xff] }
  0x41   : > { %714 = vmatpush.bf16.msra.mxu0 %v1459_v29  ;;  %v1452_v9 = vld [vmem:[%s2182_s0 + $0x60] sm:$0xff]  ;;  %v872_v14 = vld [vmem:[%s2185_s3 + $0x48] sm:$0xff]  ;;  %v874_v15 = vld [vmem:[%s2185_s3 + $0x58] sm:$0xff] }
  0x42   : > { %538 = vperm.xlu2 %1580, %v400_v30   ;;  %1531 = vmatpush.bf16.msra.mxu3 %v1459_v29  ;;  %v871_v11 = vld [vmem:[%s2185_s3 + $0x40] sm:$0xff]  ;;  %v873_v16 = vld [vmem:[%s2185_s3 + $0x50] sm:$0xff]  ;;  %v1445_v17 = vld [vmem:[%s2182_s0 + $0x28] sm:$0xff] }
  0x43   : > { %v1453_v18 = vld [vmem:[%s2182_s0 + $0x68] sm:$0xff]  ;;  %v875_v20 = vld [vmem:[%s2185_s3 + $0x60] sm:$0xff]  ;;  %v877_v23 = vld [vmem:[%s2185_s3 + $0x70] sm:$0xff] }
  0x44   : > { %v876_v24 = vld [vmem:[%s2185_s3 + $0x68] sm:$0xff]  ;;  %v878_v25 = vld [vmem:[%s2185_s3 + $0x78] sm:$0xff]  ;;  %v1446_v29 = vld [vmem:[%s2182_s0 + $0x30] sm:$0xff] }
  0x45   : > { %715 = vmatpush.bf16.msra.mxu0 %v1458_v31  ;;  %v1454_v30 = vld [vmem:[%s2182_s0 + $0x70] sm:$0xff] }
  0x46   : > { %1532 = vmatpush.bf16.msra.mxu3 %v1458_v31 }
  0x48   : > { %543 = vperm.xlu0 %1578, %v401_v32   ;;  %458 = vperm.xlu1 %1579, %v384_v33  }
  0x49   : > { %716 = vmatpush.bf16.msra.mxu0 %v1457_v34 }
  0x4a   : > { %463 = vperm.xlu2 %1580, %v385_v35   ;;  %1533 = vmatpush.bf16.msra.mxu3 %v1457_v34 }
  0x4d   : > { %717 = vmatpush.bf16.msra.mxu0 %v1456_v36 }
  0x4e   : > { %1534 = vmatpush.bf16.msra.mxu3 %v1456_v36 }
  0x50   : > { %528 = vperm.xlu0 %1578, %v398_v37   ;;  %533 = vperm.xlu1 %1579, %v399_v38   ;;  %v1447_v37 = vld [vmem:[%s2182_s0 + $0x38] sm:$0xff] }
  0x51   : > { %718 = vmatmul.bf16.vlgmr.msra.gmra.mxu0 %v1440_v39  ;;  %758 = vmatmul.bf16.vlgmr.msra.gmra.mxu3 %v1448_v40  ;;  %v1455_v38 = vld [vmem:[%s2182_s0 + $0x78] sm:$0xff] }
  0x52   : > { %448 = vperm.xlu2 %1580, %v382_v41  }
  0x58   : > { %518 = vperm.xlu1 %1579, %v396_v42   ;;  %453 = vperm.xlu0 %1578, %v383_v43  }
  0x5a   : > { %523 = vperm.xlu2 %1580, %v397_v44  }
  0x60   : > { %443 = vperm.xlu1 %1579, %v381_v45   ;;  %438 = vperm.xlu0 %1578, %v380_v46  }
  0x61   : > { %723 = vmatmul.bf16.gmra.mxu0 %v1441_v47  ;;  %763 = vmatmul.bf16.gmra.mxu3 %v1449_v48 }
  0x62   : > { %508 = vperm.xlu2 %1580, %v394_v49  }
  0x68   : > { %513 = vperm.xlu0 %1578, %v395_v50   ;;  %428 = vperm.xlu1 %1579, %v378_v51  }
  0x6a   : > { %433 = vperm.xlu2 %1580, %v379_v52  }
  0x70   : > { %498 = vperm.xlu0 %1578, %v392_v53   ;;  %503 = vperm.xlu1 %1579, %v393_v54  }
  0x71   : > { %728 = vmatmul.bf16.gmra.mxu0 %v1442_v55  ;;  %768 = vmatmul.bf16.gmra.mxu3 %v1450_v56 }
  0x72   : > { %418 = vperm.xlu2 %1580, %v376_v57  }
  0x78   : > { %488 = vperm.xlu1 %1579, %v390_v58   ;;  %423 = vperm.xlu0 %1578, %v377_v59  }
  0x7a   : > { %493 = vperm.xlu2 %1580, %v391_v60  }
  0x80   : > { %413 = vperm.xlu1 %1579, %v375_v61   ;;  %408 = vperm.xlu0 %1578, %v374_v62  }
  0x81   : > { %733 = vmatmul.bf16.gmra.mxu0 %v1443_v63  ;;  %773 = vmatmul.bf16.gmra.mxu3 %v1451_v0 }
  0x82   : > { %881 = vperm.xlu2 %1580, %v863_v1  }
  0x88   : > { %891 = vperm.xlu1 %1579, %v865_v2   ;;  %886 = vperm.xlu0 %1578, %v864_v3  }
  0x8a   : > { %896 = vperm.xlu2 %1580, %v866_v4  }
  0x8c   : > { %v1901_v5 = vpop.permute.xlu2 %548 }
  0x90   : > { %906 = vperm.xlu1 %1579, %v868_v6   ;;  %901 = vperm.xlu0 %1578, %v867_v7  }
  0x91   : > { %738 = vmatmul.bf16.gmra.mxu0 %v1444_v8  ;;  %778 = vmatmul.bf16.gmra.mxu3 %v1452_v9 }
  0x92   : > { %911 = vperm.xlu2 %1580, %v869_v10  }
  0x94   : > { %v1924_v13 = vpop.permute.xlu2 %553 }
  0x98   : > { %921 = vperm.xlu1 %1579, %v871_v11   ;;  %916 = vperm.xlu0 %1578, %v870_v12  }
  0x9a   : > { %926 = vperm.xlu2 %1580, %v872_v14  }
  0x9c   : > { %v1941_v19 = vpop.permute.xlu2 %538 }
  0xa0   : > { %936 = vperm.xlu1 %1579, %v874_v15   ;;  %931 = vperm.xlu0 %1578, %v873_v16  }
  0xa1   : > { %743 = vmatmul.bf16.gmra.mxu0 %v1445_v17  ;;  %783 = vmatmul.bf16.gmra.mxu3 %v1453_v18 }
  0xa2   : > { %v1946_v21 = vpop.permute.xlu0 %558  ;;  %v1948_v22 = vpop.permute.xlu1 %478  ;;  %941 = vperm.xlu2 %1580, %v875_v20  }
  0xa4   : > { %v1959_v26 = vpop.permute.xlu2 %463 }
  0xa8   : > { %951 = vperm.xlu1 %1579, %v877_v23   ;;  %946 = vperm.xlu0 %1578, %v876_v24  }
  0xaa   : > { %v1961_v27 = vpop.permute.xlu0 %563  ;;  %v1963_v28 = vpop.permute.xlu1 %483  ;;  %956 = vperm.xlu2 %1580, %v878_v25  }
  0xac   : > { %v1975_v33 = vpop.permute.xlu2 %448 }
  0xb1   : > { %748 = vmatmul.bf16.gmra.mxu0 %v1446_v29  ;;  %788 = vmatmul.bf16.gmra.mxu3 %v1454_v30 }
  0xb2   : > { %v1971_v31 = vpop.permute.xlu1 %473  ;;  %v1973_v32 = vpop.permute.xlu0 %468 }
  0xb4   : > { %v1981_v36 = vpop.permute.xlu2 %523 }
  0xba   : > { %v1977_v34 = vpop.permute.xlu0 %543  ;;  %v1979_v35 = vpop.permute.xlu1 %458 }
  0xbc   : > { %v509_v41 = vpop.permute.xlu2 %508 }
  0xc1   : > { %753 = vmatmul.bf16.gmra.mxu0 %v1447_v37  ;;  %793 = vmatmul.bf16.gmra.mxu3 %v1455_v38 }
  0xc2   : > { %v1989_v39 = vpop.permute.xlu0 %528  ;;  %v1991_v40 = vpop.permute.xlu1 %533 }
  0xc4   : > { %v434_v45 = vpop.permute.xlu2 %433 }
  0xca   : > { %v1993_v42 = vpop.permute.xlu1 %518  ;;  %v1995_v43 = vpop.permute.xlu0 %453 }
  0xcc   : > { %v419_v52 = vpop.permute.xlu2 %418 }
  0xce   : > { %v719_v44 = vpop.f32.mrf.mxu0 }
  0xd2   : > { %v444_v46 = vpop.permute.xlu1 %443  ;;  %v439_v47 = vpop.permute.xlu0 %438 }
  0xd4   : > { %v759_v48 = vpop.f32.mrf.mxu3  ;;  %v494_v58 = vpop.permute.xlu2 %493 }
  0xd6   : > { %v721_v49 = vpop.f32.mrf.mxu0 }
  0xda   : > { %v514_v50 = vpop.permute.xlu0 %513  ;;  %v429_v51 = vpop.permute.xlu1 %428 }
  0xdc   : > { %v761_v53 = vpop.f32.mrf.mxu3 }
  0xdd   : > { %v762_v61 = vadd.f32 %v761_v53, %v494_v58 }
  0xde   : > { %v724_v54 = vpop.f32.mrf.mxu0 }
  0xdf   : > { %v725_v59 = vadd.f32 %v724_v54, %v419_v52  ;;  %v816_v4 = vmax.f32 %v762_v61, 0.0 }
  0xe1   : > { %v801_v0 = vmax.f32 %v725_v59, 0.0 }
  0xe2   : > { %v499_v55 = vpop.permute.xlu0 %498  ;;  %v504_v56 = vpop.permute.xlu1 %503 }
  0xe4   : > { %v764_v57 = vpop.f32.mrf.mxu3 }
  0xe5   : > { %v765_v3 = vadd.f32 %v764_v57, %v499_v55 }
  0xe6   : > { %v726_v60 = vpop.f32.mrf.mxu0 }
  0xe7   : > { %v817_v14 = vmax.f32 %v765_v3, 0.0 }
  0xea   : > { %v489_v62 = vpop.permute.xlu1 %488  ;;  %v424_v63 = vpop.permute.xlu0 %423 }
  0xeb   : > { %v760_v1 = vadd.f32 %v759_v48, %v489_v62  ;;  %v727_v2 = vadd.f32 %v726_v60, %v424_v63 }
  0xec   : > { %v766_v8 = vpop.f32.mrf.mxu3 }
  0xed   : > { %v815_v6 = vmax.f32 %v760_v1, 0.0  ;;  %v802_v7 = vmax.f32 %v727_v2, 0.0  ;;  %v767_v9 = vadd.f32 %v766_v8, %v504_v56 }
  0xee   : > { %v729_v10 = vpop.f32.mrf.mxu0 }
  0xef   : > { %v1997_v11 = vpack.c.bf16 %v802_v7, %v801_v0  ;;  %v1999_v12 = vpack.c.bf16 %v816_v4, %v815_v6  ;;  %v818_v15 = vmax.f32 %v767_v9, 0.0  ;;  %v730_v24 = vadd.f32 %v729_v10, %v429_v51 }
  0xf1   : > { %v2001_v18 = vpack.c.bf16 %v818_v15, %v817_v14  ;;  %v803_v48 = vmax.f32 %v730_v24, 0.0 }
  0xf2   : > { %v414_v16 = vpop.permute.xlu1 %413  ;;  %v409_v17 = vpop.permute.xlu0 %408 }
  0xf3   : > { %v722_v20 = vadd.f32 %v721_v49, %v414_v16  ;;  %v720_v23 = vadd.f32 %v719_v44, %v409_v17 }
  0xf4   : > { %v769_v30 = vpop.f32.mrf.mxu3 }
  0xf5   : > { %v800_v25 = vmax.f32 %v722_v20, 0.0  ;;  %v799_v29 = vmax.f32 %v720_v23, 0.0  ;;  %v770_v54 = vadd.f32 %v769_v30, %v509_v41 }
  0xf6   : > { %v731_v37 = vpop.f32.mrf.mxu0 }
  0xf7   : > { %v2003_v38 = vpack.c.bf16 %v800_v25, %v799_v29  ;;  %v732_v52 = vadd.f32 %v731_v37, %v434_v45  ;;  %v819_v59 = vmax.f32 %v770_v54, 0.0 }
  0xf9   : > { %v804_v53 = vmax.f32 %v732_v52, 0.0 }
  0xfb   : > { %v2005_v55 = vpack.c.bf16 %v804_v53, %v803_v48 }
  0xfc   : > { %v771_v56 = vpop.f32.mrf.mxu3 }
  0xfd   : > { %v772_v57 = vadd.f32 %v771_v56, %v514_v50 }
  0xfe   : > { %v734_v58 = vpop.f32.mrf.mxu0 }
  0xff   : > { %v820_v60 = vmax.f32 %v772_v57, 0.0  ;;  %v735_v44 = vadd.f32 %v734_v58, %v439_v47 }
 0x101   : > { %v2007_v49 = vpack.c.bf16 %v820_v60, %v819_v59  ;;  %v805_v62 = vmax.f32 %v735_v44, 0.0 }
 0x104   : > { %v774_v51 = vpop.f32.mrf.mxu3 }
 0x105   : > { %v775_v1 = vadd.f32 %v774_v51, %v1993_v42 }
 0x106   : > { %v736_v61 = vpop.f32.mrf.mxu0 }
 0x107   : > { %v737_v63 = vadd.f32 %v736_v61, %v444_v46  ;;  %v821_v50 = vmax.f32 %v775_v1, 0.0 }
 0x109   : > { %v806_v0 = vmax.f32 %v737_v63, 0.0 }
 0x10b   : > { %v2010_v45 = vpack.c.bf16 %v806_v0, %v805_v62 }
 0x10c   : > { %v776_v41 = vpop.f32.mrf.mxu3 }
 0x10d   : > { %v777_v2 = vadd.f32 %v776_v41, %v1981_v36 }
 0x10e   : > { %v739_v3 = vpop.f32.mrf.mxu0 }
 0x10f   : > { %v822_v4 = vmax.f32 %v777_v2, 0.0 }
 0x111   : > { %v2013_v6 = vpack.c.bf16 %v822_v4, %v821_v50 }
 0x114   : > { %v779_v7 = vpop.f32.mrf.mxu3 }
 0x115   : > { %v780_v2 = vadd.f32 %v779_v7, %v1989_v39  ;;  %v1374_v39 = vld [vmem:[%s2184_s2] sm:$0xf] }
 0x116   : > { %v741_v8 = vpop.f32.mrf.mxu0 }
 0x11c   : > { %v781_v47 = vpop.f32.mrf.mxu3 }
 0x11e   : > { %v744_v9 = vpop.f32.mrf.mxu0 }
 0x11f   : > { %v745_v58 = vadd.f32 %v744_v9, %v1979_v35  ;;  %v1390_v9 = vld [vmem:[%s2184_s2 + $0x20] sm:$0xf] }
 0x121   : > { %v809_v61 = vmax.f32 %v745_v58, 0.0  ;;  %v1416_v58 = vld [vmem:[%s2184_s2 + $0x58] sm:$0xf0] }
 0x124   : > { %v784_v10 = vpop.f32.mrf.mxu3 }
 0x126   : > { %v746_v14 = vpop.f32.mrf.mxu0 }
 0x127   : > { %v747_v52 = vadd.f32 %v746_v14, %v1959_v26 }
 0x129   : > { %v810_v60 = vmax.f32 %v747_v52, 0.0 }
 0x12c   : > { %v786_v46 = vpop.f32.mrf.mxu3 }
 0x12d   : > { %v787_v62 = vadd.f32 %v786_v46, %v1977_v34  ;;  %v1468_v46 = vld [vmem:[%s2184_s2 + $0x24] sm:$0xf] }
 0x12e   : > { %v749_v15 = vpop.f32.mrf.mxu0 }
 0x12f   : > { %v750_v30 = vadd.f32 %v749_v15, %v1973_v32  ;;  %v742_v32 = vadd.f32 %v741_v8, %v1995_v43  ;;  %v782_v43 = vadd.f32 %v781_v47, %v1991_v40  ;;  %v826_v41 = vmax.f32 %v787_v62, 0.0  ;;  %v1465_v40 = vld [vmem:[%s2184_s2 + $0x4] sm:$0xf0]  ;;  %v1384_v47 = vld [vmem:[%s2184_s2 + $0x18] sm:$0xf0] }
 0x130   : > { %v823_v8 = vmax.f32 %v780_v2, 0.0  ;;  %v1375_v7 = vor.u32 %v1465_v40, %v1374_v39  ;;  %v1392_v15 = vld [vmem:[%s2184_s2 + $0x28] sm:$0xf0]  ;;  %v1432_v62 = vld [vmem:[%s2184_s2 + $0x78] sm:$0xf0]  ;;  %v892_v39 = vpop.permute.xlu1 %891 }
 0x131   : > { %v811_v59 = vmax.f32 %v750_v30, 0.0  ;;  %v808_v0 = vmax.f32 %v742_v32, 0.0  ;;  %v824_v50 = vmax.f32 %v782_v43, 0.0  ;;  %v1476_v32 = vld [vmem:[%s2184_s2 + $0x64] sm:$0xf]  ;;  %v887_v43 = vpop.permute.xlu0 %886 }
 0x134   : > { %v789_v16 = vpop.f32.mrf.mxu3 }
 0x135   : > { %v790_v26 = vadd.f32 %v789_v16, %v1901_v5  ;;  %v1395_v16 = vor.u32 %v1468_v46, %v1392_v15 }
 0x136   : > { %v751_v42 = vpop.f32.mrf.mxu0 }
 0x137   : > { %v752_v25 = vadd.f32 %v751_v42, %v1971_v31  ;;  %v827_v1 = vmax.f32 %v790_v26, 0.0  ;;  %v1398_v42 = vld [vmem:[%s2184_s2 + $0x30] sm:$0xf] }
 0x138   : > { %v907_v15 = vpop.permute.xlu1 %906 }
 0x139   : > { %v812_v53 = vmax.f32 %v752_v25, 0.0  ;;  %v1406_v25 = vld [vmem:[%s2184_s2 + $0x40] sm:$0xf] }
 0x13c   : > { %v791_v17 = vpop.f32.mrf.mxu3 }
 0x13e   : > { %v754_v20 = vpop.f32.mrf.mxu0 }
 0x13f   : > { %v755_v36 = vadd.f32 %v754_v20, %v1948_v22  ;;  %v792_v22 = vadd.f32 %v791_v17, %v1924_v13  ;;  %v1471_v17 = vld [vmem:[%s2184_s2 + $0x34] sm:$0xf0] }
 0x140   : > { %v1399_v20 = vor.u32 %v1471_v17, %v1398_v42 }
 0x141   : > { %v813_v37 = vmax.f32 %v755_v36, 0.0  ;;  %v828_v35 = vmax.f32 %v792_v22, 0.0  ;;  %v1400_v36 = vld [vmem:[%s2184_s2 + $0x38] sm:$0xf0]  ;;  %v1422_v22 = vld [vmem:[%s2184_s2 + $0x60] sm:$0xf] }
 0x143   : > { %v861_v5 = vpack.c.bf16 %v828_v35, %v827_v1 }
 0x144   : > { %v794_v23 = vpop.f32.mrf.mxu3 }
 0x145   : > { %v795_v54 = vadd.f32 %v794_v23, %v1946_v21  ;;  %v853_v21 = vpack.c.bf16 %v812_v53, %v811_v59  ;;  %v1470_v23 = vld [vmem:[%s2184_s2 + $0x34] sm:$0xf]  ;;  %v1414_v53 = vld [vmem:[%s2184_s2 + $0x50] sm:$0xf] }
 0x146   : > { %v756_v24 = vpop.f32.mrf.mxu0 }
 0x147   : > { %v757_v29 = vadd.f32 %v756_v24, %v1963_v28  ;;  %v740_v28 = vadd.f32 %v739_v3, %v1975_v33  ;;  %v829_v44 = vmax.f32 %v795_v54, 0.0  ;;  %v852_v33 = vpack.c.bf16 %v810_v60, %v809_v61  ;;  %v1475_v54 = vld [vmem:[%s2184_s2 + $0x54] sm:$0xf0]  ;;  %v1424_v60 = vld [vmem:[%s2184_s2 + $0x68] sm:$0xf0] }
 0x148   : > { %v1403_v24 = vor.u32 %v1470_v23, %v1400_v36  ;;  %v1427_v26 = vor.u32 %v1476_v32, %v1424_v60  ;;  %v1478_v61 = vld [vmem:[%s2184_s2 + $0x74] sm:$0xf]  ;;  %v922_v32 = vpop.permute.xlu1 %921 }
 0x149   : > { %v814_v48 = vmax.f32 %v757_v29, 0.0  ;;  %v807_v13 = vmax.f32 %v740_v28, 0.0  ;;  %v1473_v29 = vld [vmem:[%s2184_s2 + $0x44] sm:$0xf0]  ;;  %v1435_v35 = vor.u32 %v1478_v61, %v1432_v62 }
 0x14a   : > { %v1407_v30 = vor.u32 %v1473_v29, %v1406_v25 }
 0x14b   : > { %v854_v56 = vpack.c.bf16 %v814_v48, %v813_v37  ;;  %v851_v34 = vpack.c.bf16 %v808_v0, %v807_v13  ;;  %v1472_v37 = vld [vmem:[%s2184_s2 + $0x44] sm:$0xf]  ;;  %v1408_v48 = vld [vmem:[%s2184_s2 + $0x48] sm:$0xf0] }
 0x14c   : > { %v796_v57 = vpop.f32.mrf.mxu3  ;;  %v1411_v52 = vor.u32 %v1472_v37, %v1408_v48 }
 0x14d   : > { %v797_v31 = vadd.f32 %v796_v57, %v1961_v27  ;;  %1039 = vmatpush.bf16.msra.mxu1 %v854_v56  ;;  %v785_v27 = vadd.f32 %v784_v10, %v1941_v19  ;;  %v859_v19 = vpack.c.bf16 %v824_v50, %v823_v8  ;;  %v1469_v10 = vld [vmem:[%s2184_s2 + $0x24] sm:$0xf0]  ;;  %v1415_v56 = vor.u32 %v1475_v54, %v1414_v53  ;;  %v1474_v57 = vld [vmem:[%s2184_s2 + $0x54] sm:$0xf] }
 0x14e   : > { %v1391_v14 = vor.u32 %v1469_v10, %v1390_v9  ;;  %v1419_v59 = vor.u32 %v1474_v57, %v1416_v58  ;;  %v902_v10 = vpop.permute.xlu0 %901 }
 0x14f   : > { %v830_v51 = vmax.f32 %v797_v31, 0.0  ;;  %v825_v3 = vmax.f32 %v785_v27, 0.0  ;;  %v1477_v31 = vld [vmem:[%s2184_s2 + $0x64] sm:$0xf0]  ;;  %v882_v27 = vpop.permute.xlu2 %881 }
 0x150   : > { %v1423_v28 = vor.u32 %v1477_v31, %v1422_v22 }
 0x151   : > { %1040 = vmatpush.bf16.msra.mxu1 %v853_v21  ;;  %v862_v63 = vpack.c.bf16 %v830_v51, %v829_v44  ;;  %v860_v4 = vpack.c.bf16 %v826_v41, %v825_v3  ;;  %v1430_v44 = vld [vmem:[%s2184_s2 + $0x70] sm:$0xf]  ;;  %v1479_v51 = vld [vmem:[%s2184_s2 + $0x74] sm:$0xf0] }
 0x152   : > { %v1431_v21 = vor.u32 %v1479_v51, %v1430_v44 }
 0x153   : > { %1088 = vmatpush.bf16.msra.mxu2 %v862_v63 }
 0x155   : > { %1041 = vmatpush.bf16.msra.mxu1 %v852_v33 }
 0x157   : > { %1089 = vmatpush.bf16.msra.mxu2 %v861_v5 }
 0x159   : > { %1042 = vmatpush.bf16.msra.mxu1 %v851_v34 }
 0x15b   : > { %1090 = vmatpush.bf16.msra.mxu2 %v860_v4 }
 0x15d   : > { %1043 = vmatpush.bf16.msra.mxu1 %v2010_v45 }
 0x15f   : > { %1091 = vmatpush.bf16.msra.mxu2 %v859_v19 }
 0x161   : > { %1044 = vmatpush.bf16.msra.mxu1 %v2005_v55  ;;  %v1464_v55 = vld [vmem:[%s2184_s2 + $0x4] sm:$0xf] }
 0x163   : > { %1092 = vmatpush.bf16.msra.mxu2 %v2013_v6  ;;  %v1466_v6 = vld [vmem:[%s2184_s2 + $0x14] sm:$0xf] }
 0x165   : > { %1045 = vmatpush.bf16.msra.mxu1 %v1997_v11  ;;  %v1376_v11 = vld [vmem:[%s2184_s2 + $0x8] sm:$0xf0] }
 0x166   : > { %v1379_v45 = vor.u32 %v1464_v55, %v1376_v11  ;;  %v897_v55 = vpop.permute.xlu2 %896 }
 0x167   : > { %1093 = vmatpush.bf16.msra.mxu2 %v2007_v49  ;;  %v1382_v49 = vld [vmem:[%s2184_s2 + $0x10] sm:$0xf] }
 0x169   : > { %1046 = vmatpush.bf16.msra.mxu1 %v2003_v38 }
 0x16b   : > { %1094 = vmatpush.bf16.msra.mxu2 %v2001_v18  ;;  %v1467_v18 = vld [vmem:[%s2184_s2 + $0x14] sm:$0xf0] }
 0x16c   : > { %1047 = vmatmul.bf16.vlgmr.msra.gmra.mxu1 %v1375_v7  ;;  %v1383_v38 = vor.u32 %v1467_v18, %v1382_v49 }
 0x16f   : > { %1095 = vmatpush.bf16.msra.mxu2 %v1999_v12  ;;  %v1387_v12 = vor.u32 %v1466_v6, %v1384_v47 }
 0x172   : > { %1096 = vmatmul.bf16.vlgmr.msra.gmra.mxu2 %v1379_v45 }
 0x17c   : > { %1052 = vmatmul.bf16.gmra.mxu1 %v1383_v38 }
 0x182   : > { %1101 = vmatmul.bf16.gmra.mxu2 %v1387_v12 }
 0x18c   : > { %1057 = vmatmul.bf16.gmra.mxu1 %v1391_v14 }
 0x192   : > { %1106 = vmatmul.bf16.gmra.mxu2 %v1395_v16 }
 0x19c   : > { %1062 = vmatmul.bf16.gmra.mxu1 %v1399_v20 }
 0x1a2   : > { %1111 = vmatmul.bf16.gmra.mxu2 %v1403_v24 }
 0x1ac   : > { %1067 = vmatmul.bf16.gmra.mxu1 %v1407_v30  ;;  %v912_v30 = vpop.permute.xlu2 %911 }
 0x1b2   : > { %1116 = vmatmul.bf16.gmra.mxu2 %v1411_v52  ;;  %v917_v52 = vpop.permute.xlu0 %916 }
 0x1b4   : > { %v927_v44 = vpop.permute.xlu2 %926 }
 0x1bc   : > { %1072 = vmatmul.bf16.gmra.mxu1 %v1415_v56 }
 0x1c2   : > { %1121 = vmatmul.bf16.gmra.mxu2 %v1419_v59 }
 0x1cc   : > { %1077 = vmatmul.bf16.gmra.mxu1 %v1423_v28 }
 0x1d2   : > { %1126 = vmatmul.bf16.gmra.mxu2 %v1427_v26 }
 0x1dc   : > { %1082 = vmatmul.bf16.gmra.mxu1 %v1431_v21 }
 0x1e2   : > { %1131 = vmatmul.bf16.gmra.mxu2 %v1435_v35 }
 0x1e9   : > { %v1048_v63 = vpop.f32.mrf.mxu1 }
 0x1ea   : > { %v1049_v33 = vadd.f32 %v1048_v63, %v882_v27 }
 0x1f1   : > { %v1050_v13 = vpop.f32.mrf.mxu1 }
 0x1f2   : > { %v1051_v41 = vadd.f32 %v1050_v13, %v887_v43  ;;  %v937_v43 = vpop.permute.xlu1 %936 }
 0x1f5   : > { %v1097_v0 = vpop.f32.mrf.mxu2 }
 0x1f6   : > { %v1098_v5 = vadd.f32 %v1097_v0, %v1049_v33 }
 0x1f8   : > { %v1137_v34 = vmax.f32 %v1098_v5, 0.0 }
 0x1f9   : > { %v1053_v1 = vpop.f32.mrf.mxu1 }
 0x1fa   : > { %v1054_v7 = vadd.f32 %v1053_v1, %v892_v39  ;;  %v932_v1 = vpop.permute.xlu0 %931 }
 0x1fd   : > { %v1099_v2 = vpop.f32.mrf.mxu2 }
 0x1fe   : > { %v1100_v3 = vadd.f32 %v1099_v2, %v1051_v41 }
 0x200   : > { %v1138_v50 = vmax.f32 %v1100_v3, 0.0 }
 0x201   : > { %v1055_v4 = vpop.f32.mrf.mxu1 }
 0x202   : > { %v1483_v8 = vpack.c.bf16 %v1138_v50, %v1137_v34  ;;  %v1056_v11 = vadd.f32 %v1055_v4, %v897_v55  ;;  %v947_v55 = vpop.permute.xlu0 %946 }
 0x204   : > { %1484 = vst [vmem:[%s2136_s10] sm:$0xff] %v1483_v8  }
 0x205   : > { %v1102_v19 = vpop.f32.mrf.mxu2 }
 0x206   : > { %v1103_v45 = vadd.f32 %v1102_v19, %v1054_v7 }
 0x208   : > { %v1139_v38 = vmax.f32 %v1103_v45, 0.0 }
 0x209   : > { %v1058_v40 = vpop.f32.mrf.mxu1 }
 0x20a   : > { %v1059_v46 = vadd.f32 %v1058_v40, %v902_v10  ;;  %v942_v40 = vpop.permute.xlu2 %941  ;;  %v952_v10 = vpop.permute.xlu1 %951 }
 0x20d   : > { %v1104_v49 = vpop.f32.mrf.mxu2 }
 0x20e   : > { %v1105_v18 = vadd.f32 %v1104_v49, %v1056_v11 }
 0x210   : > { %v1140_v6 = vmax.f32 %v1105_v18, 0.0 }
 0x211   : > { %v1060_v47 = vpop.f32.mrf.mxu1 }
 0x212   : > { %v1488_v12 = vpack.c.bf16 %v1140_v6, %v1139_v38  ;;  %v1061_v16 = vadd.f32 %v1060_v47, %v907_v15  ;;  %v957_v15 = vpop.permute.xlu2 %956 }
 0x214   : > { %1520 = vst [vmem:[%s2136_s10 + $0x8] sm:$0xff] %v1488_v12  }
 0x215   : > { %v1107_v9 = vpop.f32.mrf.mxu2 }
 0x216   : > { %v1108_v42 = vadd.f32 %v1107_v9, %v1059_v46 }
 0x218   : > { %v1141_v23 = vmax.f32 %v1108_v42, 0.0 }
 0x219   : > { %v1063_v14 = vpop.f32.mrf.mxu1 }
 0x21a   : > { %v1064_v48 = vadd.f32 %v1063_v14, %v912_v30 }
 0x21d   : > { %v1109_v17 = vpop.f32.mrf.mxu2 }
 0x21e   : > { %v1110_v20 = vadd.f32 %v1109_v17, %v1061_v16 }
 0x220   : > { %v1142_v36 = vmax.f32 %v1110_v20, 0.0 }
 0x221   : > { %v1065_v24 = vpop.f32.mrf.mxu1 }
 0x222   : > { %v1493_v25 = vpack.c.bf16 %v1142_v36, %v1141_v23  ;;  %v1066_v53 = vadd.f32 %v1065_v24, %v917_v52 }
 0x224   : > { %1521 = vst [vmem:[%s2136_s10 + $0x10] sm:$0xff] %v1493_v25  }
 0x225   : > { %v1112_v29 = vpop.f32.mrf.mxu2 }
 0x226   : > { %v1113_v54 = vadd.f32 %v1112_v29, %v1064_v48 }
 0x228   : > { %v1143_v58 = vmax.f32 %v1113_v54, 0.0 }
 0x229   : > { %v1068_v37 = vpop.f32.mrf.mxu1 }
 0x22a   : > { %v1069_v26 = vadd.f32 %v1068_v37, %v922_v32 }
 0x22d   : > { %v1114_v56 = vpop.f32.mrf.mxu2 }
 0x22e   : > { %v1115_v57 = vadd.f32 %v1114_v56, %v1066_v53 }
 0x230   : > { %v1144_v59 = vmax.f32 %v1115_v57, 0.0 }
 0x231   : > { %v1070_v22 = vpop.f32.mrf.mxu1 }
 0x232   : > { %v1498_v31 = vpack.c.bf16 %v1144_v59, %v1143_v58  ;;  %v1071_v51 = vadd.f32 %v1070_v22, %v927_v44 }
 0x234   : > { %1522 = vst [vmem:[%s2136_s10 + $0x18] sm:$0xff] %v1498_v31  }
 0x235   : > { %v1117_v28 = vpop.f32.mrf.mxu2 }
 0x236   : > { %v1118_v21 = vadd.f32 %v1117_v28, %v1069_v26 }
 0x238   : > { %v1145_v35 = vmax.f32 %v1118_v21, 0.0 }
 0x239   : > { %v1073_v60 = vpop.f32.mrf.mxu1 }
 0x23a   : > { %v1074_v33 = vadd.f32 %v1073_v60, %v932_v1 }
 0x23d   : > { %v1119_v61 = vpop.f32.mrf.mxu2 }
 0x23e   : > { %v1120_v62 = vadd.f32 %v1119_v61, %v1071_v51 }
 0x240   : > { %v1146_v63 = vmax.f32 %v1120_v62, 0.0 }
 0x241   : > { %v1075_v13 = vpop.f32.mrf.mxu1 }
 0x242   : > { %v1503_v0 = vpack.c.bf16 %v1146_v63, %v1145_v35  ;;  %v1076_v5 = vadd.f32 %v1075_v13, %v937_v43 }
 0x244   : > { %1523 = vst [vmem:[%s2136_s10 + $0x20] sm:$0xff] %v1503_v0  }
 0x245   : > { %v1122_v27 = vpop.f32.mrf.mxu2 }
 0x246   : > { %v1123_v2 = vadd.f32 %v1122_v27, %v1074_v33 }
 0x248   : > { %v1147_v50 = vmax.f32 %v1123_v2, 0.0 }
 0x249   : > { %v1078_v41 = vpop.f32.mrf.mxu1 }
 0x24a   : > { %v1079_v7 = vadd.f32 %v1078_v41, %v942_v40 }
 0x24d   : > { %v1124_v3 = vpop.f32.mrf.mxu2 }
 0x24e   : > { %v1125_v34 = vadd.f32 %v1124_v3, %v1076_v5 }
 0x250   : > { %v1148_v4 = vmax.f32 %v1125_v34, 0.0 }
 0x251   : > { %v1080_v19 = vpop.f32.mrf.mxu1 }
 0x252   : > { %v1508_v8 = vpack.c.bf16 %v1148_v4, %v1147_v50  ;;  %v1081_v11 = vadd.f32 %v1080_v19, %v947_v55 }
 0x254   : > { %1524 = vst [vmem:[%s2136_s10 + $0x28] sm:$0xff] %v1508_v8  }
 0x255   : > { %v1127_v39 = vpop.f32.mrf.mxu2 }
 0x256   : > { %v1128_v45 = vadd.f32 %v1127_v39, %v1079_v7 }
 0x258   : > { %v1149_v6 = vmax.f32 %v1128_v45, 0.0 }
 0x259   : > { %v1083_v38 = vpop.f32.mrf.mxu1 }
 0x25a   : > { %v1084_v46 = vadd.f32 %v1083_v38, %v952_v10 }
 0x25d   : > { %v1129_v49 = vpop.f32.mrf.mxu2 }
 0x25e   : > { %v1130_v18 = vadd.f32 %v1129_v49, %v1081_v11 }
 0x260   : > { %v1150_v47 = vmax.f32 %v1130_v18, 0.0 }
 0x261   : > { %v1085_v14 = vpop.f32.mrf.mxu1 }
 0x262   : > { %v1513_v12 = vpack.c.bf16 %v1150_v47, %v1149_v6  ;;  %v1086_v16 = vadd.f32 %v1085_v14, %v957_v15 }
 0x264   : > { %1525 = vst [vmem:[%s2136_s10 + $0x30] sm:$0xff] %v1513_v12  }
 0x265   : > { %v1132_v9 = vpop.f32.mrf.mxu2 }
 0x266   : > { %v1133_v42 = vadd.f32 %v1132_v9, %v1084_v46 }
 0x268   : > { %v1151_v23 = vmax.f32 %v1133_v42, 0.0 }
 0x26d   : > { %v1134_v17 = vpop.f32.mrf.mxu2 }
 0x26e   : > { %v1135_v20 = vadd.f32 %v1134_v17, %v1086_v16 }
 0x270   : > { %v1152_v36 = vmax.f32 %v1135_v20, 0.0 }
 0x272   : > { %v1518_v24 = vpack.c.bf16 %v1152_v36, %v1151_v23 }
 0x274   : > { %1526 = vst [vmem:[%s2136_s10 + $0x38] sm:$0xff] %v1518_v24  }
 0x275   : > { %1608 = shalt.err (!%p1605_p5)
}
 0x276   : > { %s1646_s16 = smov 64   ;;  %s1647_s9 = smov 128  }
 0x277   : > { %s1648_s10 = smov 4  }
 0x278   : > { %1535 = dma.vmem_to_hbm [thread:$0]  (%p1717_p6), %s1198_s14, 1024, %s1200_s15, %s1186_s22, %s1646_s16, %s1647_s9, %s1648_s10  }
 0x279 PF: > { %s1214_s17 = sand.u32 1, %s1631_s18   ;;  %p1538_p7 = pnand %p1270_p9, %p1721_p8 }
 0x27a   : > { %s1215_s11 = scalar_lea.sflag [#allocation4], %s1214_s17 }
 0x27b   : > { %p1539_p10 = pneg %p1538_p7 }
 0x27d   : > { %1626 = dma.done.wait (%p1539_p10), %s1215_s11, 1024  }
 0x27e   : > { %1628 = vsyncadd (%p1539_p10), %s1215_s11, 4294966272  ;;  %p15_p11 = scmp.ge.s32.totalorder %s1702_s24, 4   ;;  %s2190_s18 = smov %s1635_s19 }
 0x27f   : > { %s2191_s19 = smov %s1639_s20  ;;  %s2192_s20 = smov %s1715_s27 }
 0x280   : > { %s2193_s21 = smov %s1702_s24  ;;  %17 = sbr.rel (!%p15_p11) target bundleno = 3 (0x3), region = 121 }
 0x285   :  { %1221 = vsyncpa [#allocation4], 1 }
 0x286   :  { %1223 = vsyncpa [#allocation4 + $0x1], 1 }

// kernel: tpu_custom_call.1
= control target key start
LH: loop header
LB: loop body
LE: loop exit
PB: predicated region body
PF: predicated region fallthrough
CT: control target
= control target key end

     0   :  { %10 = vsyncpa [#allocation4], 0  ;;  %s2182_s0 = inlined_call_operand.vmem [shape: bf16[256,128], index: 0, kind: input, shape index: {}]   ;;  %s2183_s1 = inlined_call_operand.vmem [shape: f32[256,1], index: 1, kind: input, shape index: {}]   ;;  %s2184_s2 = inlined_call_operand.vmem [shape: bf16[128,256], index: 2, kind: input, shape index: {}]   ;;  %s2185_s3 = inlined_call_operand.vmem [shape: f32[128,1], index: 3, kind: input, shape index: {}]   ;;  %s2186_s4 = inlined_call_operand.vmem [shape: bf16[128,256], index: 4, kind: input, shape index: {}]   ;;  %s2187_s5 = inlined_call_operand.hbm [shape: bf16[128,256], index: 5, kind: output, shape index: {}]  }
   0x1   :  { %12 = vsyncpa [#allocation4 + $0x1], 0  ;;  %s1679_s18 = smov 0   ;;  %s1681_s19 = smov 0  }
   0x2   :  { %s1683_s20 = smov 0   ;;  %s1685_s21 = smov 0  }
   0x3 LB: > { %s1267_s22 = sadd.s32 4294967295, %s1643_s21   ;;  %s1268_s23 = sadd.s32 4294967294, %s1643_s21   ;;  %s1643_s21 = sphi %s1685_s21, %s2193_s21   ;;  %s1639_s20 = sphi %s1683_s20, %s2192_s20   ;;  %s1635_s19 = sphi %s1681_s19, %s2191_s19   ;;  %s1631_s18 = sphi %s1679_s18, %s2190_s18  }
   0x4   : > { %s1702_s24 = sadd.s32 1, %s1643_s21   ;;  %s109_s25 = sadd.s32 1, %s1639_s20 }
   0x5   : > { %s106_s26 = ssub.s32 %s1643_s21, %s1702_s24  ;;  %p116_p0 = scmp.ne.s32.totalorder %s1639_s20, %s1635_s19 }
   0x6   : > { %p107_p1 = scmp.eq.s32.totalorder %s106_s26, 0  ;;  %p117_p2 = scmp.eq.s32.totalorder %s1643_s21, 0 }
   0x7   : > { %p146_p3 = scmp.eq.s32.totalorder %s1267_s22, 1  ;;  %p151_p4 = scmp.ne.s32.totalorder %s1635_s19, %s1631_s18 }
   0x8   : > { %s1715_s27 = scalar_select %p107_p1, %s1639_s20, %s109_s25  }
   0x9   : > { %p118_p5 = por %p117_p2, %p116_p0  ;;  %p1717_p6 = por %p146_p3, %p116_p0 }
   0xa   : > { %p152_p7 = scmp.eq.s32.totalorder %s1268_s23, 1  ;;  %p1270_p9 = scmp.ge.s32.totalorder %s1643_s21, 2 }
   0xc   : > { %p1721_p8 = por %p152_p7, %p151_p4  ;;  %180 = sbr.rel (%p1270_p9) target bundleno = 37 (0x25), region = 32 }
  0x11   : > { %183 = sbr.rel (!%p118_p5) target bundleno = 37 (0x25), region = 36  ;;  %s185_s30 = sand.u32 (%p118_p5), 1, %s1639_s20  }
  0x12   : > { %s1272_s6 = sshll.u32 (%p118_p5), %s1643_s21, 2  ;;  %s1271_s7 = sshll.u32 (%p118_p5), %s185_s30, 6 }
  0x13   : > { %s1733_s10 = scalar_lea.vmem (%p118_p5), %s2186_s4, %s1272_s6  ;;  %s187_s11 = scalar_lea.vmem (%p118_p5), [#allocation2], %s1271_s7 }
  0x14   : > { %v206_v0 = vld [vmem:[%s1733_s10] sm:$0xf] (%p118_p5)  ;;  %v208_v1 = vld [vmem:[%s1733_s10 + $0x8] sm:$0xf] (%p118_p5)  ;;  %v210_v2 = vld [vmem:[%s1733_s10 + $0x10] sm:$0xf] (%p118_p5) }
  0x15   : > { %207 = vst [vmem:[%s187_s11] sm:$0xf] (%p118_p5), %v206_v0  ;;  %v212_v3 = vld [vmem:[%s1733_s10 + $0x18] sm:$0xf] (%p118_p5)  ;;  %v214_v4 = vld [vmem:[%s1733_s10 + $0x20] sm:$0xf] (%p118_p5) }
  0x16   : > { %209 = vst [vmem:[%s187_s11 + $0x4] sm:$0xf] %v208_v1  ;;  %v216_v5 = vld [vmem:[%s1733_s10 + $0x28] sm:$0xf]  ;;  %v218_v6 = vld [vmem:[%s1733_s10 + $0x30] sm:$0xf] }
  0x17   : > { %211 = vst [vmem:[%s187_s11 + $0x8] sm:$0xf] %v210_v2  ;;  %v220_v7 = vld [vmem:[%s1733_s10 + $0x38] sm:$0xf]  ;;  %v222_v8 = vld [vmem:[%s1733_s10 + $0x40] sm:$0xf] }
  0x18   : > { %213 = vst [vmem:[%s187_s11 + $0xc] sm:$0xf] %v212_v3  ;;  %v224_v9 = vld [vmem:[%s1733_s10 + $0x48] sm:$0xf]  ;;  %v226_v10 = vld [vmem:[%s1733_s10 + $0x50] sm:$0xf] }
  0x19   : > { %215 = vst [vmem:[%s187_s11 + $0x10] sm:$0xf] %v214_v4  ;;  %v228_v11 = vld [vmem:[%s1733_s10 + $0x58] sm:$0xf]  ;;  %v230_v12 = vld [vmem:[%s1733_s10 + $0x60] sm:$0xf] }
  0x1a   : > { %217 = vst [vmem:[%s187_s11 + $0x14] sm:$0xf] %v216_v5  ;;  %v232_v13 = vld [vmem:[%s1733_s10 + $0x68] sm:$0xf]  ;;  %v234_v14 = vld [vmem:[%s1733_s10 + $0x70] sm:$0xf] }
  0x1b   : > { %219 = vst [vmem:[%s187_s11 + $0x18] sm:$0xf] %v218_v6  ;;  %v236_v15 = vld [vmem:[%s1733_s10 + $0x78] sm:$0xf] }
  0x1c   : > { %221 = vst [vmem:[%s187_s11 + $0x1c] sm:$0xf] %v220_v7 }
  0x1d   : > { %223 = vst [vmem:[%s187_s11 + $0x20] sm:$0xf] %v222_v8 }
  0x1e   : > { %225 = vst [vmem:[%s187_s11 + $0x24] sm:$0xf] %v224_v9 }
  0x1f   : > { %227 = vst [vmem:[%s187_s11 + $0x28] sm:$0xf] %v226_v10 }
  0x20   : > { %229 = vst [vmem:[%s187_s11 + $0x2c] sm:$0xf] %v228_v11 }
  0x21   : > { %231 = vst [vmem:[%s187_s11 + $0x30] sm:$0xf] %v230_v12 }
  0x22   : > { %233 = vst [vmem:[%s187_s11 + $0x34] sm:$0xf] %v232_v13 }
  0x23   : > { %235 = vst [vmem:[%s187_s11 + $0x38] sm:$0xf] %v234_v14 }
  0x24   : > { %237 = vst [vmem:[%s187_s11 + $0x3c] sm:$0xf] %v236_v15 }
  0x25 PF: > { %p1273_p10 = scmp.ge.s32.totalorder %s1643_s21, 1  ;;  %p292_p11 = scmp.lt.s32.totalorder %s1643_s21, 3 }
  0x27   : > { %p293_p12 = pnand %p1273_p10, %p292_p11 }
  0x28   : > { %s299_s16 = sand.u32 (!%p293_p12), 1, %s1635_s19   ;;  %s1601_s6 = scalar_lea.hbm (!%p293_p12), %s2187_s5, 128 }
  0x29   : > { %296 = sbr.rel (%p293_p12) target bundleno = 633 (0x279), region = 77  ;;  %s1762_s17 = sshll.u32 (!%p293_p12), %s299_s16, 6 }
  0x2a   : > { %s1768_s26 = scalar_lea.vmem (!%p293_p12), [#allocation2], %s1762_s17  ;;  %s2136_s10 = scalar_lea.vmem (!%p293_p12), [#allocation3], %s1762_s17 }
  0x2b   : > { %s1437_s17 = sshll.u32 (!%p293_p12), %s1267_s22, 2  ;;  %s1197_s14 = sshll.u32 (!%p293_p12), %s2136_s10, 4  ;;  %s1198_s14 = int_to_ptr.vmem [resolvable:$true] %s1197_s14 }
  0x2c   : > { %s1196_s13 = scalar_lea.hbm (!%p293_p12), %s2187_s5, %s1437_s17  ;;  %s1186_s22 = scalar_lea.sflag (!%p293_p12), [#allocation4], %s299_s16 }
  0x2d   : > { %s1199_s15 = sshll.u32 (!%p293_p12), %s1196_s13, 4  ;;  %s1200_s15 = int_to_ptr.hbm [resolvable:$true] %s1199_s15 }
  0x2e   : > { %v404_v16 = vld [vmem:[%s2183_s1 + $0xf0] sm:$0xff]  ;;  %v1645_v18 = vmov 0   ;;  %v402_v19 = vld [vmem:[%s2183_s1 + $0xe0] sm:$0xff]  ;;  %v1463_v20 = vld [vmem:[%s1768_s26 + $0x38] sm:$0xff]  ;;  %s1595_s23 = sshra.s32 %s1200_s15, 4  ;;  %s1596_s23 = int_to_ptr.hbm [resolvable:$true] %s1595_s23 }
  0x2f   : > { %v388_v17 = vld [vmem:[%s2183_s1 + $0x70] sm:$0xff]  ;;  %1579 = vset.pattern.permute.xlu1 %v1645_v18  ;;  %1578 = vset.pattern.permute.xlu0 %v1645_v18  ;;  %v405_v22 = vld [vmem:[%s2183_s1 + $0xf8] sm:$0xff]  ;;  %v1461_v24 = vld [vmem:[%s1768_s26 + $0x28] sm:$0xff]  ;;  %s1597_s25 = scalar_lea.hbm %s1596_s23, 64  ;;  %p1602_p2 = scmp.lt.s32.totalorder %s1596_s23, %s2187_s5 }
  0x30   : > { %558 = vperm.xlu0 %1578, %v404_v16   ;;  %478 = vperm.xlu1 %1579, %v388_v17   ;;  %v1462_v21 = vld [vmem:[%s1768_s26 + $0x30] sm:$0xff]  ;;  %v389_v23 = vld [vmem:[%s2183_s1 + $0x78] sm:$0xff]  ;;  %v403_v25 = vld [vmem:[%s2183_s1 + $0xe8] sm:$0xff]  ;;  %p1598_p13 = scmp.ne.s32.totalorder %s1596_s23, %s1597_s25  ;;  %p1603_p3 = scmp.lt.s32.totalorder %s1601_s6, %s1597_s25 }
  0x31   : > { %1580 = vset.pattern.permute.xlu2 %v1645_v18  ;;  %710 = vmatpush.bf16.msra.mxu0 %v1463_v20  ;;  %v1460_v26 = vld [vmem:[%s1768_s26 + $0x20] sm:$0xff]  ;;  %v387_v27 = vld [vmem:[%s2183_s1 + $0x68] sm:$0xff]  ;;  %v1459_v29 = vld [vmem:[%s1768_s26 + $0x18] sm:$0xff] }
  0x32   : > { %548 = vperm.xlu2 %1580, %v402_v19   ;;  %1527 = vmatpush.bf16.msra.mxu3 %v1463_v20  ;;  %v386_v28 = vld [vmem:[%s2183_s1 + $0x60] sm:$0xff]  ;;  %v400_v30 = vld [vmem:[%s2183_s1 + $0xd0] sm:$0xff]  ;;  %v401_v32 = vld [vmem:[%s2183_s1 + $0xd8] sm:$0xff]  ;;  %p1599_p0 = pnand %p1598_p13, %p1717_p6  ;;  %p1604_p4 = por %p1603_p3, %p1602_p2 }
  0x33   : > { %v1458_v31 = vld [vmem:[%s1768_s26 + $0x10] sm:$0xff]  ;;  %v1457_v34 = vld [vmem:[%s1768_s26 + $0x8] sm:$0xff]  ;;  %v385_v35 = vld [vmem:[%s2183_s1 + $0x58] sm:$0xff] }
  0x34   : > { %v384_v33 = vld [vmem:[%s2183_s1 + $0x50] sm:$0xff]  ;;  %v1456_v36 = vld [vmem:[%s1768_s26] sm:$0xff]  ;;  %v399_v38 = vld [vmem:[%s2183_s1 + $0xc8] sm:$0xff]  ;;  %p1600_p1 = pneg %p1599_p0 }
  0x35   : > { %711 = vmatpush.bf16.msra.mxu0 %v1462_v21  ;;  %v398_v37 = vld [vmem:[%s2183_s1 + $0xc0] sm:$0xff]  ;;  %v396_v42 = vld [vmem:[%s2183_s1 + $0xb0] sm:$0xff]  ;;  %v383_v43 = vld [vmem:[%s2183_s1 + $0x48] sm:$0xff] }
  0x36   : > { %1528 = vmatpush.bf16.msra.mxu3 %v1462_v21  ;;  %v1440_v39 = vld [vmem:[%s2182_s0] sm:$0xff]  ;;  %v397_v44 = vld [vmem:[%s2183_s1 + $0xb8] sm:$0xff]  ;;  %v380_v46 = vld [vmem:[%s2183_s1 + $0x30] sm:$0xff]  ;;  %p1605_p5 = pnand %p1604_p4, %p1600_p1 }
  0x37   : > { %v1448_v40 = vld [vmem:[%s2182_s0 + $0x40] sm:$0xff]  ;;  %v381_v45 = vld [vmem:[%s2183_s1 + $0x38] sm:$0xff]  ;;  %v1441_v47 = vld [vmem:[%s2182_s0 + $0x8] sm:$0xff] }
  0x38   : > { %563 = vperm.xlu0 %1578, %v405_v22   ;;  %483 = vperm.xlu1 %1579, %v389_v23   ;;  %v382_v41 = vld [vmem:[%s2183_s1 + $0x40] sm:$0xff]  ;;  %v1449_v48 = vld [vmem:[%s2182_s0 + $0x48] sm:$0xff]  ;;  %v392_v53 = vld [vmem:[%s2183_s1 + $0x90] sm:$0xff] }
  0x39   : > { %712 = vmatpush.bf16.msra.mxu0 %v1461_v24  ;;  %v394_v49 = vld [vmem:[%s2183_s1 + $0xa0] sm:$0xff]  ;;  %v395_v50 = vld [vmem:[%s2183_s1 + $0xa8] sm:$0xff]  ;;  %v393_v54 = vld [vmem:[%s2183_s1 + $0x98] sm:$0xff] }
  0x3a   : > { %553 = vperm.xlu2 %1580, %v403_v25   ;;  %1529 = vmatpush.bf16.msra.mxu3 %v1461_v24  ;;  %v378_v51 = vld [vmem:[%s2183_s1 + $0x20] sm:$0xff]  ;;  %v379_v52 = vld [vmem:[%s2183_s1 + $0x28] sm:$0xff]  ;;  %v1442_v55 = vld [vmem:[%s2182_s0 + $0x10] sm:$0xff] }
  0x3b   : > { %v1450_v56 = vld [vmem:[%s2182_s0 + $0x50] sm:$0xff]  ;;  %v390_v58 = vld [vmem:[%s2183_s1 + $0x80] sm:$0xff]  ;;  %v377_v59 = vld [vmem:[%s2183_s1 + $0x18] sm:$0xff] }
  0x3c   : > { %v376_v57 = vld [vmem:[%s2183_s1 + $0x10] sm:$0xff]  ;;  %v391_v60 = vld [vmem:[%s2183_s1 + $0x88] sm:$0xff]  ;;  %v374_v62 = vld [vmem:[%s2183_s1] sm:$0xff] }
  0x3d   : > { %713 = vmatpush.bf16.msra.mxu0 %v1460_v26  ;;  %v375_v61 = vld [vmem:[%s2183_s1 + $0x8] sm:$0xff]  ;;  %v1443_v63 = vld [vmem:[%s2182_s0 + $0x18] sm:$0xff]  ;;  %v863_v1 = vld [vmem:[%s2185_s3] sm:$0xff] }
  0x3e   : > { %1530 = vmatpush.bf16.msra.mxu3 %v1460_v26  ;;  %v1451_v0 = vld [vmem:[%s2182_s0 + $0x58] sm:$0xff]  ;;  %v865_v2 = vld [vmem:[%s2185_s3 + $0x10] sm:$0xff]  ;;  %v864_v3 = vld [vmem:[%s2185_s3 + $0x8] sm:$0xff] }
  0x3f   : > { %v866_v4 = vld [vmem:[%s2185_s3 + $0x18] sm:$0xff]  ;;  %v868_v6 = vld [vmem:[%s2185_s3 + $0x28] sm:$0xff]  ;;  %v867_v7 = vld [vmem:[%s2185_s3 + $0x20] sm:$0xff] }
  0x40   : > { %473 = vperm.xlu1 %1579, %v387_v27   ;;  %468 = vperm.xlu0 %1578, %v386_v28   ;;  %v1444_v8 = vld [vmem:[%s2182_s0 + $0x20] sm:$0xff]  ;;  %v869_v10 = vld [vmem:[%s2185_s3 + $0x30] sm:$0xff]  ;;  %v870_v12 = vld [vmem:[%s2185_s3 + $0x38] sm:$0xff] }
  0x41   : > { %714 = vmatpush.bf16.msra.mxu0 %v1459_v29  ;;  %v1452_v9 = vld [vmem:[%s2182_s0 + $0x60] sm:$0xff]  ;;  %v872_v14 = vld [vmem:[%s2185_s3 + $0x48] sm:$0xff]  ;;  %v874_v15 = vld [vmem:[%s2185_s3 + $0x58] sm:$0xff] }
  0x42   : > { %538 = vperm.xlu2 %1580, %v400_v30   ;;  %1531 = vmatpush.bf16.msra.mxu3 %v1459_v29  ;;  %v871_v11 = vld [vmem:[%s2185_s3 + $0x40] sm:$0xff]  ;;  %v873_v16 = vld [vmem:[%s2185_s3 + $0x50] sm:$0xff]  ;;  %v1445_v17 = vld [vmem:[%s2182_s0 + $0x28] sm:$0xff] }
  0x43   : > { %v1453_v18 = vld [vmem:[%s2182_s0 + $0x68] sm:$0xff]  ;;  %v875_v20 = vld [vmem:[%s2185_s3 + $0x60] sm:$0xff]  ;;  %v877_v23 = vld [vmem:[%s2185_s3 + $0x70] sm:$0xff] }
  0x44   : > { %v876_v24 = vld [vmem:[%s2185_s3 + $0x68] sm:$0xff]  ;;  %v878_v25 = vld [vmem:[%s2185_s3 + $0x78] sm:$0xff]  ;;  %v1446_v29 = vld [vmem:[%s2182_s0 + $0x30] sm:$0xff] }
  0x45   : > { %715 = vmatpush.bf16.msra.mxu0 %v1458_v31  ;;  %v1454_v30 = vld [vmem:[%s2182_s0 + $0x70] sm:$0xff] }
  0x46   : > { %1532 = vmatpush.bf16.msra.mxu3 %v1458_v31 }
  0x48   : > { %543 = vperm.xlu0 %1578, %v401_v32   ;;  %458 = vperm.xlu1 %1579, %v384_v33  }
  0x49   : > { %716 = vmatpush.bf16.msra.mxu0 %v1457_v34 }
  0x4a   : > { %463 = vperm.xlu2 %1580, %v385_v35   ;;  %1533 = vmatpush.bf16.msra.mxu3 %v1457_v34 }
  0x4d   : > { %717 = vmatpush.bf16.msra.mxu0 %v1456_v36 }
  0x4e   : > { %1534 = vmatpush.bf16.msra.mxu3 %v1456_v36 }
  0x50   : > { %528 = vperm.xlu0 %1578, %v398_v37   ;;  %533 = vperm.xlu1 %1579, %v399_v38   ;;  %v1447_v37 = vld [vmem:[%s2182_s0 + $0x38] sm:$0xff] }
  0x51   : > { %718 = vmatmul.bf16.vlgmr.msra.gmra.mxu0 %v1440_v39  ;;  %758 = vmatmul.bf16.vlgmr.msra.gmra.mxu3 %v1448_v40  ;;  %v1455_v38 = vld [vmem:[%s2182_s0 + $0x78] sm:$0xff] }
  0x52   : > { %448 = vperm.xlu2 %1580, %v382_v41  }
  0x58   : > { %518 = vperm.xlu1 %1579, %v396_v42   ;;  %453 = vperm.xlu0 %1578, %v383_v43  }
  0x5a   : > { %523 = vperm.xlu2 %1580, %v397_v44  }
  0x60   : > { %443 = vperm.xlu1 %1579, %v381_v45   ;;  %438 = vperm.xlu0 %1578, %v380_v46  }
  0x61   : > { %723 = vmatmul.bf16.gmra.mxu0 %v1441_v47  ;;  %763 = vmatmul.bf16.gmra.mxu3 %v1449_v48 }
  0x62   : > { %508 = vperm.xlu2 %1580, %v394_v49  }
  0x68   : > { %513 = vperm.xlu0 %1578, %v395_v50   ;;  %428 = vperm.xlu1 %1579, %v378_v51  }
  0x6a   : > { %433 = vperm.xlu2 %1580, %v379_v52  }
  0x70   : > { %498 = vperm.xlu0 %1578, %v392_v53   ;;  %503 = vperm.xlu1 %1579, %v393_v54  }
  0x71   : > { %728 = vmatmul.bf16.gmra.mxu0 %v1442_v55  ;;  %768 = vmatmul.bf16.gmra.mxu3 %v1450_v56 }
  0x72   : > { %418 = vperm.xlu2 %1580, %v376_v57  }
  0x78   : > { %488 = vperm.xlu1 %1579, %v390_v58   ;;  %423 = vperm.xlu0 %1578, %v377_v59  }
  0x7a   : > { %493 = vperm.xlu2 %1580, %v391_v60  }
  0x80   : > { %413 = vperm.xlu1 %1579, %v375_v61   ;;  %408 = vperm.xlu0 %1578, %v374_v62  }
  0x81   : > { %733 = vmatmul.bf16.gmra.mxu0 %v1443_v63  ;;  %773 = vmatmul.bf16.gmra.mxu3 %v1451_v0 }
  0x82   : > { %881 = vperm.xlu2 %1580, %v863_v1  }
  0x88   : > { %891 = vperm.xlu1 %1579, %v865_v2   ;;  %886 = vperm.xlu0 %1578, %v864_v3  }
  0x8a   : > { %896 = vperm.xlu2 %1580, %v866_v4  }
  0x8c   : > { %v1901_v5 = vpop.permute.xlu2 %548 }
  0x90   : > { %906 = vperm.xlu1 %1579, %v868_v6   ;;  %901 = vperm.xlu0 %1578, %v867_v7  }
  0x91   : > { %738 = vmatmul.bf16.gmra.mxu0 %v1444_v8  ;;  %778 = vmatmul.bf16.gmra.mxu3 %v1452_v9 }
  0x92   : > { %911 = vperm.xlu2 %1580, %v869_v10  }
  0x94   : > { %v1924_v13 = vpop.permute.xlu2 %553 }
  0x98   : > { %921 = vperm.xlu1 %1579, %v871_v11   ;;  %916 = vperm.xlu0 %1578, %v870_v12  }
  0x9a   : > { %926 = vperm.xlu2 %1580, %v872_v14  }
  0x9c   : > { %v1941_v19 = vpop.permute.xlu2 %538 }
  0xa0   : > { %936 = vperm.xlu1 %1579, %v874_v15   ;;  %931 = vperm.xlu0 %1578, %v873_v16  }
  0xa1   : > { %743 = vmatmul.bf16.gmra.mxu0 %v1445_v17  ;;  %783 = vmatmul.bf16.gmra.mxu3 %v1453_v18 }
  0xa2   : > { %v1946_v21 = vpop.permute.xlu0 %558  ;;  %v1948_v22 = vpop.permute.xlu1 %478  ;;  %941 = vperm.xlu2 %1580, %v875_v20  }
  0xa4   : > { %v1959_v26 = vpop.permute.xlu2 %463 }
  0xa8   : > { %951 = vperm.xlu1 %1579, %v877_v23   ;;  %946 = vperm.xlu0 %1578, %v876_v24  }
  0xaa   : > { %v1961_v27 = vpop.permute.xlu0 %563  ;;  %v1963_v28 = vpop.permute.xlu1 %483  ;;  %956 = vperm.xlu2 %1580, %v878_v25  }
  0xac   : > { %v1975_v33 = vpop.permute.xlu2 %448 }
  0xb1   : > { %748 = vmatmul.bf16.gmra.mxu0 %v1446_v29  ;;  %788 = vmatmul.bf16.gmra.mxu3 %v1454_v30 }
  0xb2   : > { %v1971_v31 = vpop.permute.xlu1 %473  ;;  %v1973_v32 = vpop.permute.xlu0 %468 }
  0xb4   : > { %v1981_v36 = vpop.permute.xlu2 %523 }
  0xba   : > { %v1977_v34 = vpop.permute.xlu0 %543  ;;  %v1979_v35 = vpop.permute.xlu1 %458 }
  0xbc   : > { %v509_v41 = vpop.permute.xlu2 %508 }
  0xc1   : > { %753 = vmatmul.bf16.gmra.mxu0 %v1447_v37  ;;  %793 = vmatmul.bf16.gmra.mxu3 %v1455_v38 }
  0xc2   : > { %v1989_v39 = vpop.permute.xlu0 %528  ;;  %v1991_v40 = vpop.permute.xlu1 %533 }
  0xc4   : > { %v434_v45 = vpop.permute.xlu2 %433 }
  0xca   : > { %v1993_v42 = vpop.permute.xlu1 %518  ;;  %v1995_v43 = vpop.permute.xlu0 %453 }
  0xcc   : > { %v419_v52 = vpop.permute.xlu2 %418 }
  0xce   : > { %v719_v44 = vpop.f32.mrf.mxu0 }
  0xd2   : > { %v444_v46 = vpop.permute.xlu1 %443  ;;  %v439_v47 = vpop.permute.xlu0 %438 }
  0xd4   : > { %v759_v48 = vpop.f32.mrf.mxu3  ;;  %v494_v58 = vpop.permute.xlu2 %493 }
  0xd6   : > { %v721_v49 = vpop.f32.mrf.mxu0 }
  0xda   : > { %v514_v50 = vpop.permute.xlu0 %513  ;;  %v429_v51 = vpop.permute.xlu1 %428 }
  0xdc   : > { %v761_v53 = vpop.f32.mrf.mxu3 }
  0xdd   : > { %v762_v61 = vadd.f32 %v761_v53, %v494_v58 }
  0xde   : > { %v724_v54 = vpop.f32.mrf.mxu0 }
  0xdf   : > { %v725_v59 = vadd.f32 %v724_v54, %v419_v52  ;;  %v816_v4 = vmax.f32 %v762_v61, 0.0 }
  0xe1   : > { %v801_v0 = vmax.f32 %v725_v59, 0.0 }
  0xe2   : > { %v499_v55 = vpop.permute.xlu0 %498  ;;  %v504_v56 = vpop.permute.xlu1 %503 }
  0xe4   : > { %v764_v57 = vpop.f32.mrf.mxu3 }
  0xe5   : > { %v765_v3 = vadd.f32 %v764_v57, %v499_v55 }
  0xe6   : > { %v726_v60 = vpop.f32.mrf.mxu0 }
  0xe7   : > { %v817_v14 = vmax.f32 %v765_v3, 0.0 }
  0xea   : > { %v489_v62 = vpop.permute.xlu1 %488  ;;  %v424_v63 = vpop.permute.xlu0 %423 }
  0xeb   : > { %v760_v1 = vadd.f32 %v759_v48, %v489_v62  ;;  %v727_v2 = vadd.f32 %v726_v60, %v424_v63 }
  0xec   : > { %v766_v8 = vpop.f32.mrf.mxu3 }
  0xed   : > { %v815_v6 = vmax.f32 %v760_v1, 0.0  ;;  %v802_v7 = vmax.f32 %v727_v2, 0.0  ;;  %v767_v9 = vadd.f32 %v766_v8, %v504_v56 }
  0xee   : > { %v729_v10 = vpop.f32.mrf.mxu0 }
  0xef   : > { %v1997_v11 = vpack.c.bf16 %v802_v7, %v801_v0  ;;  %v1999_v12 = vpack.c.bf16 %v816_v4, %v815_v6  ;;  %v818_v15 = vmax.f32 %v767_v9, 0.0  ;;  %v730_v24 = vadd.f32 %v729_v10, %v429_v51 }
  0xf1   : > { %v2001_v18 = vpack.c.bf16 %v818_v15, %v817_v14  ;;  %v803_v48 = vmax.f32 %v730_v24, 0.0 }
  0xf2   : > { %v414_v16 = vpop.permute.xlu1 %413  ;;  %v409_v17 = vpop.permute.xlu0 %408 }
  0xf3   : > { %v722_v20 = vadd.f32 %v721_v49, %v414_v16  ;;  %v720_v23 = vadd.f32 %v719_v44, %v409_v17 }
  0xf4   : > { %v769_v30 = vpop.f32.mrf.mxu3 }
  0xf5   : > { %v800_v25 = vmax.f32 %v722_v20, 0.0  ;;  %v799_v29 = vmax.f32 %v720_v23, 0.0  ;;  %v770_v54 = vadd.f32 %v769_v30, %v509_v41 }
  0xf6   : > { %v731_v37 = vpop.f32.mrf.mxu0 }
  0xf7   : > { %v2003_v38 = vpack.c.bf16 %v800_v25, %v799_v29  ;;  %v732_v52 = vadd.f32 %v731_v37, %v434_v45  ;;  %v819_v59 = vmax.f32 %v770_v54, 0.0 }
  0xf9   : > { %v804_v53 = vmax.f32 %v732_v52, 0.0 }
  0xfb   : > { %v2005_v55 = vpack.c.bf16 %v804_v53, %v803_v48 }
  0xfc   : > { %v771_v56 = vpop.f32.mrf.mxu3 }
  0xfd   : > { %v772_v57 = vadd.f32 %v771_v56, %v514_v50 }
  0xfe   : > { %v734_v58 = vpop.f32.mrf.mxu0 }
  0xff   : > { %v820_v60 = vmax.f32 %v772_v57, 0.0  ;;  %v735_v44 = vadd.f32 %v734_v58, %v439_v47 }
 0x101   : > { %v2007_v49 = vpack.c.bf16 %v820_v60, %v819_v59  ;;  %v805_v62 = vmax.f32 %v735_v44, 0.0 }
 0x104   : > { %v774_v51 = vpop.f32.mrf.mxu3 }
 0x105   : > { %v775_v1 = vadd.f32 %v774_v51, %v1993_v42 }
 0x106   : > { %v736_v61 = vpop.f32.mrf.mxu0 }
 0x107   : > { %v737_v63 = vadd.f32 %v736_v61, %v444_v46  ;;  %v821_v50 = vmax.f32 %v775_v1, 0.0 }
 0x109   : > { %v806_v0 = vmax.f32 %v737_v63, 0.0 }
 0x10b   : > { %v2010_v45 = vpack.c.bf16 %v806_v0, %v805_v62 }
 0x10c   : > { %v776_v41 = vpop.f32.mrf.mxu3 }
 0x10d   : > { %v777_v2 = vadd.f32 %v776_v41, %v1981_v36 }
 0x10e   : > { %v739_v3 = vpop.f32.mrf.mxu0 }
 0x10f   : > { %v822_v4 = vmax.f32 %v777_v2, 0.0 }
 0x111   : > { %v2013_v6 = vpack.c.bf16 %v822_v4, %v821_v50 }
 0x114   : > { %v779_v7 = vpop.f32.mrf.mxu3 }
 0x115   : > { %v780_v2 = vadd.f32 %v779_v7, %v1989_v39  ;;  %v1374_v39 = vld [vmem:[%s2184_s2] sm:$0xf] }
 0x116   : > { %v741_v8 = vpop.f32.mrf.mxu0 }
 0x11c   : > { %v781_v47 = vpop.f32.mrf.mxu3 }
 0x11e   : > { %v744_v9 = vpop.f32.mrf.mxu0 }
 0x11f   : > { %v745_v58 = vadd.f32 %v744_v9, %v1979_v35  ;;  %v1390_v9 = vld [vmem:[%s2184_s2 + $0x20] sm:$0xf] }
 0x121   : > { %v809_v61 = vmax.f32 %v745_v58, 0.0  ;;  %v1416_v58 = vld [vmem:[%s2184_s2 + $0x58] sm:$0xf0] }
 0x124   : > { %v784_v10 = vpop.f32.mrf.mxu3 }
 0x126   : > { %v746_v14 = vpop.f32.mrf.mxu0 }
 0x127   : > { %v747_v52 = vadd.f32 %v746_v14, %v1959_v26 }
 0x129   : > { %v810_v60 = vmax.f32 %v747_v52, 0.0 }
 0x12c   : > { %v786_v46 = vpop.f32.mrf.mxu3 }
 0x12d   : > { %v787_v62 = vadd.f32 %v786_v46, %v1977_v34  ;;  %v1468_v46 = vld [vmem:[%s2184_s2 + $0x24] sm:$0xf] }
 0x12e   : > { %v749_v15 = vpop.f32.mrf.mxu0 }
 0x12f   : > { %v750_v30 = vadd.f32 %v749_v15, %v1973_v32  ;;  %v742_v32 = vadd.f32 %v741_v8, %v1995_v43  ;;  %v782_v43 = vadd.f32 %v781_v47, %v1991_v40  ;;  %v826_v41 = vmax.f32 %v787_v62, 0.0  ;;  %v1465_v40 = vld [vmem:[%s2184_s2 + $0x4] sm:$0xf0]  ;;  %v1384_v47 = vld [vmem:[%s2184_s2 + $0x18] sm:$0xf0] }
 0x130   : > { %v823_v8 = vmax.f32 %v780_v2, 0.0  ;;  %v1375_v7 = vor.u32 %v1465_v40, %v1374_v39  ;;  %v1392_v15 = vld [vmem:[%s2184_s2 + $0x28] sm:$0xf0]  ;;  %v1432_v62 = vld [vmem:[%s2184_s2 + $0x78] sm:$0xf0]  ;;  %v892_v39 = vpop.permute.xlu1 %891 }
 0x131   : > { %v811_v59 = vmax.f32 %v750_v30, 0.0  ;;  %v808_v0 = vmax.f32 %v742_v32, 0.0  ;;  %v824_v50 = vmax.f32 %v782_v43, 0.0  ;;  %v1476_v32 = vld [vmem:[%s2184_s2 + $0x64] sm:$0xf]  ;;  %v887_v43 = vpop.permute.xlu0 %886 }
 0x134   : > { %v789_v16 = vpop.f32.mrf.mxu3 }
 0x135   : > { %v790_v26 = vadd.f32 %v789_v16, %v1901_v5  ;;  %v1395_v16 = vor.u32 %v1468_v46, %v1392_v15 }
 0x136   : > { %v751_v42 = vpop.f32.mrf.mxu0 }
 0x137   : > { %v752_v25 = vadd.f32 %v751_v42, %v1971_v31  ;;  %v827_v1 = vmax.f32 %v790_v26, 0.0  ;;  %v1398_v42 = vld [vmem:[%s2184_s2 + $0x30] sm:$0xf] }
 0x138   : > { %v907_v15 = vpop.permute.xlu1 %906 }
 0x139   : > { %v812_v53 = vmax.f32 %v752_v25, 0.0  ;;  %v1406_v25 = vld [vmem:[%s2184_s2 + $0x40] sm:$0xf] }
 0x13c   : > { %v791_v17 = vpop.f32.mrf.mxu3 }
 0x13e   : > { %v754_v20 = vpop.f32.mrf.mxu0 }
 0x13f   : > { %v755_v36 = vadd.f32 %v754_v20, %v1948_v22  ;;  %v792_v22 = vadd.f32 %v791_v17, %v1924_v13  ;;  %v1471_v17 = vld [vmem:[%s2184_s2 + $0x34] sm:$0xf0] }
 0x140   : > { %v1399_v20 = vor.u32 %v1471_v17, %v1398_v42 }
 0x141   : > { %v813_v37 = vmax.f32 %v755_v36, 0.0  ;;  %v828_v35 = vmax.f32 %v792_v22, 0.0  ;;  %v1400_v36 = vld [vmem:[%s2184_s2 + $0x38] sm:$0xf0]  ;;  %v1422_v22 = vld [vmem:[%s2184_s2 + $0x60] sm:$0xf] }
 0x143   : > { %v861_v5 = vpack.c.bf16 %v828_v35, %v827_v1 }
 0x144   : > { %v794_v23 = vpop.f32.mrf.mxu3 }
 0x145   : > { %v795_v54 = vadd.f32 %v794_v23, %v1946_v21  ;;  %v853_v21 = vpack.c.bf16 %v812_v53, %v811_v59  ;;  %v1470_v23 = vld [vmem:[%s2184_s2 + $0x34] sm:$0xf]  ;;  %v1414_v53 = vld [vmem:[%s2184_s2 + $0x50] sm:$0xf] }
 0x146   : > { %v756_v24 = vpop.f32.mrf.mxu0 }
 0x147   : > { %v757_v29 = vadd.f32 %v756_v24, %v1963_v28  ;;  %v740_v28 = vadd.f32 %v739_v3, %v1975_v33  ;;  %v829_v44 = vmax.f32 %v795_v54, 0.0  ;;  %v852_v33 = vpack.c.bf16 %v810_v60, %v809_v61  ;;  %v1475_v54 = vld [vmem:[%s2184_s2 + $0x54] sm:$0xf0]  ;;  %v1424_v60 = vld [vmem:[%s2184_s2 + $0x68] sm:$0xf0] }
 0x148   : > { %v1403_v24 = vor.u32 %v1470_v23, %v1400_v36  ;;  %v1427_v26 = vor.u32 %v1476_v32, %v1424_v60  ;;  %v1478_v61 = vld [vmem:[%s2184_s2 + $0x74] sm:$0xf]  ;;  %v922_v32 = vpop.permute.xlu1 %921 }
 0x149   : > { %v814_v48 = vmax.f32 %v757_v29, 0.0  ;;  %v807_v13 = vmax.f32 %v740_v28, 0.0  ;;  %v1473_v29 = vld [vmem:[%s2184_s2 + $0x44] sm:$0xf0]  ;;  %v1435_v35 = vor.u32 %v1478_v61, %v1432_v62 }
 0x14a   : > { %v1407_v30 = vor.u32 %v1473_v29, %v1406_v25 }
 0x14b   : > { %v854_v56 = vpack.c.bf16 %v814_v48, %v813_v37  ;;  %v851_v34 = vpack.c.bf16 %v808_v0, %v807_v13  ;;  %v1472_v37 = vld [vmem:[%s2184_s2 + $0x44] sm:$0xf]  ;;  %v1408_v48 = vld [vmem:[%s2184_s2 + $0x48] sm:$0xf0] }
 0x14c   : > { %v796_v57 = vpop.f32.mrf.mxu3  ;;  %v1411_v52 = vor.u32 %v1472_v37, %v1408_v48 }
 0x14d   : > { %v797_v31 = vadd.f32 %v796_v57, %v1961_v27  ;;  %1039 = vmatpush.bf16.msra.mxu1 %v854_v56  ;;  %v785_v27 = vadd.f32 %v784_v10, %v1941_v19  ;;  %v859_v19 = vpack.c.bf16 %v824_v50, %v823_v8  ;;  %v1469_v10 = vld [vmem:[%s2184_s2 + $0x24] sm:$0xf0]  ;;  %v1415_v56 = vor.u32 %v1475_v54, %v1414_v53  ;;  %v1474_v57 = vld [vmem:[%s2184_s2 + $0x54] sm:$0xf] }
 0x14e   : > { %v1391_v14 = vor.u32 %v1469_v10, %v1390_v9  ;;  %v1419_v59 = vor.u32 %v1474_v57, %v1416_v58  ;;  %v902_v10 = vpop.permute.xlu0 %901 }
 0x14f   : > { %v830_v51 = vmax.f32 %v797_v31, 0.0  ;;  %v825_v3 = vmax.f32 %v785_v27, 0.0  ;;  %v1477_v31 = vld [vmem:[%s2184_s2 + $0x64] sm:$0xf0]  ;;  %v882_v27 = vpop.permute.xlu2 %881 }
 0x150   : > { %v1423_v28 = vor.u32 %v1477_v31, %v1422_v22 }
 0x151   : > { %1040 = vmatpush.bf16.msra.mxu1 %v853_v21  ;;  %v862_v63 = vpack.c.bf16 %v830_v51, %v829_v44  ;;  %v860_v4 = vpack.c.bf16 %v826_v41, %v825_v3  ;;  %v1430_v44 = vld [vmem:[%s2184_s2 + $0x70] sm:$0xf]  ;;  %v1479_v51 = vld [vmem:[%s2184_s2 + $0x74] sm:$0xf0] }
 0x152   : > { %v1431_v21 = vor.u32 %v1479_v51, %v1430_v44 }
 0x153   : > { %1088 = vmatpush.bf16.msra.mxu2 %v862_v63 }
 0x155   : > { %1041 = vmatpush.bf16.msra.mxu1 %v852_v33 }
 0x157   : > { %1089 = vmatpush.bf16.msra.mxu2 %v861_v5 }
 0x159   : > { %1042 = vmatpush.bf16.msra.mxu1 %v851_v34 }
 0x15b   : > { %1090 = vmatpush.bf16.msra.mxu2 %v860_v4 }
 0x15d   : > { %1043 = vmatpush.bf16.msra.mxu1 %v2010_v45 }
 0x15f   : > { %1091 = vmatpush.bf16.msra.mxu2 %v859_v19 }
 0x161   : > { %1044 = vmatpush.bf16.msra.mxu1 %v2005_v55  ;;  %v1464_v55 = vld [vmem:[%s2184_s2 + $0x4] sm:$0xf] }
 0x163   : > { %1092 = vmatpush.bf16.msra.mxu2 %v2013_v6  ;;  %v1466_v6 = vld [vmem:[%s2184_s2 + $0x14] sm:$0xf] }
 0x165   : > { %1045 = vmatpush.bf16.msra.mxu1 %v1997_v11  ;;  %v1376_v11 = vld [vmem:[%s2184_s2 + $0x8] sm:$0xf0] }
 0x166   : > { %v1379_v45 = vor.u32 %v1464_v55, %v1376_v11  ;;  %v897_v55 = vpop.permute.xlu2 %896 }
 0x167   : > { %1093 = vmatpush.bf16.msra.mxu2 %v2007_v49  ;;  %v1382_v49 = vld [vmem:[%s2184_s2 + $0x10] sm:$0xf] }
 0x169   : > { %1046 = vmatpush.bf16.msra.mxu1 %v2003_v38 }
 0x16b   : > { %1094 = vmatpush.bf16.msra.mxu2 %v2001_v18  ;;  %v1467_v18 = vld [vmem:[%s2184_s2 + $0x14] sm:$0xf0] }
 0x16c   : > { %1047 = vmatmul.bf16.vlgmr.msra.gmra.mxu1 %v1375_v7  ;;  %v1383_v38 = vor.u32 %v1467_v18, %v1382_v49 }
 0x16f   : > { %1095 = vmatpush.bf16.msra.mxu2 %v1999_v12  ;;  %v1387_v12 = vor.u32 %v1466_v6, %v1384_v47 }
 0x172   : > { %1096 = vmatmul.bf16.vlgmr.msra.gmra.mxu2 %v1379_v45 }
 0x17c   : > { %1052 = vmatmul.bf16.gmra.mxu1 %v1383_v38 }
 0x182   : > { %1101 = vmatmul.bf16.gmra.mxu2 %v1387_v12 }
 0x18c   : > { %1057 = vmatmul.bf16.gmra.mxu1 %v1391_v14 }
 0x192   : > { %1106 = vmatmul.bf16.gmra.mxu2 %v1395_v16 }
 0x19c   : > { %1062 = vmatmul.bf16.gmra.mxu1 %v1399_v20 }
 0x1a2   : > { %1111 = vmatmul.bf16.gmra.mxu2 %v1403_v24 }
 0x1ac   : > { %1067 = vmatmul.bf16.gmra.mxu1 %v1407_v30  ;;  %v912_v30 = vpop.permute.xlu2 %911 }
 0x1b2   : > { %1116 = vmatmul.bf16.gmra.mxu2 %v1411_v52  ;;  %v917_v52 = vpop.permute.xlu0 %916 }
 0x1b4   : > { %v927_v44 = vpop.permute.xlu2 %926 }
 0x1bc   : > { %1072 = vmatmul.bf16.gmra.mxu1 %v1415_v56 }
 0x1c2   : > { %1121 = vmatmul.bf16.gmra.mxu2 %v1419_v59 }
 0x1cc   : > { %1077 = vmatmul.bf16.gmra.mxu1 %v1423_v28 }
 0x1d2   : > { %1126 = vmatmul.bf16.gmra.mxu2 %v1427_v26 }
 0x1dc   : > { %1082 = vmatmul.bf16.gmra.mxu1 %v1431_v21 }
 0x1e2   : > { %1131 = vmatmul.bf16.gmra.mxu2 %v1435_v35 }
 0x1e9   : > { %v1048_v63 = vpop.f32.mrf.mxu1 }
 0x1ea   : > { %v1049_v33 = vadd.f32 %v1048_v63, %v882_v27 }
 0x1f1   : > { %v1050_v13 = vpop.f32.mrf.mxu1 }
 0x1f2   : > { %v1051_v41 = vadd.f32 %v1050_v13, %v887_v43  ;;  %v937_v43 = vpop.permute.xlu1 %936 }
 0x1f5   : > { %v1097_v0 = vpop.f32.mrf.mxu2 }
 0x1f6   : > { %v1098_v5 = vadd.f32 %v1097_v0, %v1049_v33 }
 0x1f8   : > { %v1137_v34 = vmax.f32 %v1098_v5, 0.0 }
 0x1f9   : > { %v1053_v1 = vpop.f32.mrf.mxu1 }
 0x1fa   : > { %v1054_v7 = vadd.f32 %v1053_v1, %v892_v39  ;;  %v932_v1 = vpop.permute.xlu0 %931 }
 0x1fd   : > { %v1099_v2 = vpop.f32.mrf.mxu2 }
 0x1fe   : > { %v1100_v3 = vadd.f32 %v1099_v2, %v1051_v41 }
 0x200   : > { %v1138_v50 = vmax.f32 %v1100_v3, 0.0 }
 0x201   : > { %v1055_v4 = vpop.f32.mrf.mxu1 }
 0x202   : > { %v1483_v8 = vpack.c.bf16 %v1138_v50, %v1137_v34  ;;  %v1056_v11 = vadd.f32 %v1055_v4, %v897_v55  ;;  %v947_v55 = vpop.permute.xlu0 %946 }
 0x204   : > { %1484 = vst [vmem:[%s2136_s10] sm:$0xff] %v1483_v8  }
 0x205   : > { %v1102_v19 = vpop.f32.mrf.mxu2 }
 0x206   : > { %v1103_v45 = vadd.f32 %v1102_v19, %v1054_v7 }
 0x208   : > { %v1139_v38 = vmax.f32 %v1103_v45, 0.0 }
 0x209   : > { %v1058_v40 = vpop.f32.mrf.mxu1 }
 0x20a   : > { %v1059_v46 = vadd.f32 %v1058_v40, %v902_v10  ;;  %v942_v40 = vpop.permute.xlu2 %941  ;;  %v952_v10 = vpop.permute.xlu1 %951 }
 0x20d   : > { %v1104_v49 = vpop.f32.mrf.mxu2 }
 0x20e   : > { %v1105_v18 = vadd.f32 %v1104_v49, %v1056_v11 }
 0x210   : > { %v1140_v6 = vmax.f32 %v1105_v18, 0.0 }
 0x211   : > { %v1060_v47 = vpop.f32.mrf.mxu1 }
 0x212   : > { %v1488_v12 = vpack.c.bf16 %v1140_v6, %v1139_v38  ;;  %v1061_v16 = vadd.f32 %v1060_v47, %v907_v15  ;;  %v957_v15 = vpop.permute.xlu2 %956 }
 0x214   : > { %1520 = vst [vmem:[%s2136_s10 + $0x8] sm:$0xff] %v1488_v12  }
 0x215   : > { %v1107_v9 = vpop.f32.mrf.mxu2 }
 0x216   : > { %v1108_v42 = vadd.f32 %v1107_v9, %v1059_v46 }
 0x218   : > { %v1141_v23 = vmax.f32 %v1108_v42, 0.0 }
 0x219   : > { %v1063_v14 = vpop.f32.mrf.mxu1 }
 0x21a   : > { %v1064_v48 = vadd.f32 %v1063_v14, %v912_v30 }
 0x21d   : > { %v1109_v17 = vpop.f32.mrf.mxu2 }
 0x21e   : > { %v1110_v20 = vadd.f32 %v1109_v17, %v1061_v16 }
 0x220   : > { %v1142_v36 = vmax.f32 %v1110_v20, 0.0 }
 0x221   : > { %v1065_v24 = vpop.f32.mrf.mxu1 }
 0x222   : > { %v1493_v25 = vpack.c.bf16 %v1142_v36, %v1141_v23  ;;  %v1066_v53 = vadd.f32 %v1065_v24, %v917_v52 }
 0x224   : > { %1521 = vst [vmem:[%s2136_s10 + $0x10] sm:$0xff] %v1493_v25  }
 0x225   : > { %v1112_v29 = vpop.f32.mrf.mxu2 }
 0x226   : > { %v1113_v54 = vadd.f32 %v1112_v29, %v1064_v48 }
 0x228   : > { %v1143_v58 = vmax.f32 %v1113_v54, 0.0 }
 0x229   : > { %v1068_v37 = vpop.f32.mrf.mxu1 }
 0x22a   : > { %v1069_v26 = vadd.f32 %v1068_v37, %v922_v32 }
 0x22d   : > { %v1114_v56 = vpop.f32.mrf.mxu2 }
 0x22e   : > { %v1115_v57 = vadd.f32 %v1114_v56, %v1066_v53 }
 0x230   : > { %v1144_v59 = vmax.f32 %v1115_v57, 0.0 }
 0x231   : > { %v1070_v22 = vpop.f32.mrf.mxu1 }
 0x232   : > { %v1498_v31 = vpack.c.bf16 %v1144_v59, %v1143_v58  ;;  %v1071_v51 = vadd.f32 %v1070_v22, %v927_v44 }
 0x234   : > { %1522 = vst [vmem:[%s2136_s10 + $0x18] sm:$0xff] %v1498_v31  }
 0x235   : > { %v1117_v28 = vpop.f32.mrf.mxu2 }
 0x236   : > { %v1118_v21 = vadd.f32 %v1117_v28, %v1069_v26 }
 0x238   : > { %v1145_v35 = vmax.f32 %v1118_v21, 0.0 }
 0x239   : > { %v1073_v60 = vpop.f32.mrf.mxu1 }
 0x23a   : > { %v1074_v33 = vadd.f32 %v1073_v60, %v932_v1 }
 0x23d   : > { %v1119_v61 = vpop.f32.mrf.mxu2 }
 0x23e   : > { %v1120_v62 = vadd.f32 %v1119_v61, %v1071_v51 }
 0x240   : > { %v1146_v63 = vmax.f32 %v1120_v62, 0.0 }
 0x241   : > { %v1075_v13 = vpop.f32.mrf.mxu1 }
 0x242   : > { %v1503_v0 = vpack.c.bf16 %v1146_v63, %v1145_v35  ;;  %v1076_v5 = vadd.f32 %v1075_v13, %v937_v43 }
 0x244   : > { %1523 = vst [vmem:[%s2136_s10 + $0x20] sm:$0xff] %v1503_v0  }
 0x245   : > { %v1122_v27 = vpop.f32.mrf.mxu2 }
 0x246   : > { %v1123_v2 = vadd.f32 %v1122_v27, %v1074_v33 }
 0x248   : > { %v1147_v50 = vmax.f32 %v1123_v2, 0.0 }
 0x249   : > { %v1078_v41 = vpop.f32.mrf.mxu1 }
 0x24a   : > { %v1079_v7 = vadd.f32 %v1078_v41, %v942_v40 }
 0x24d   : > { %v1124_v3 = vpop.f32.mrf.mxu2 }
 0x24e   : > { %v1125_v34 = vadd.f32 %v1124_v3, %v1076_v5 }
 0x250   : > { %v1148_v4 = vmax.f32 %v1125_v34, 0.0 }
 0x251   : > { %v1080_v19 = vpop.f32.mrf.mxu1 }
 0x252   : > { %v1508_v8 = vpack.c.bf16 %v1148_v4, %v1147_v50  ;;  %v1081_v11 = vadd.f32 %v1080_v19, %v947_v55 }
 0x254   : > { %1524 = vst [vmem:[%s2136_s10 + $0x28] sm:$0xff] %v1508_v8  }
 0x255   : > { %v1127_v39 = vpop.f32.mrf.mxu2 }
 0x256   : > { %v1128_v45 = vadd.f32 %v1127_v39, %v1079_v7 }
 0x258   : > { %v1149_v6 = vmax.f32 %v1128_v45, 0.0 }
 0x259   : > { %v1083_v38 = vpop.f32.mrf.mxu1 }
 0x25a   : > { %v1084_v46 = vadd.f32 %v1083_v38, %v952_v10 }
 0x25d   : > { %v1129_v49 = vpop.f32.mrf.mxu2 }
 0x25e   : > { %v1130_v18 = vadd.f32 %v1129_v49, %v1081_v11 }
 0x260   : > { %v1150_v47 = vmax.f32 %v1130_v18, 0.0 }
 0x261   : > { %v1085_v14 = vpop.f32.mrf.mxu1 }
 0x262   : > { %v1513_v12 = vpack.c.bf16 %v1150_v47, %v1149_v6  ;;  %v1086_v16 = vadd.f32 %v1085_v14, %v957_v15 }
 0x264   : > { %1525 = vst [vmem:[%s2136_s10 + $0x30] sm:$0xff] %v1513_v12  }
 0x265   : > { %v1132_v9 = vpop.f32.mrf.mxu2 }
 0x266   : > { %v1133_v42 = vadd.f32 %v1132_v9, %v1084_v46 }
 0x268   : > { %v1151_v23 = vmax.f32 %v1133_v42, 0.0 }
 0x26d   : > { %v1134_v17 = vpop.f32.mrf.mxu2 }
 0x26e   : > { %v1135_v20 = vadd.f32 %v1134_v17, %v1086_v16 }
 0x270   : > { %v1152_v36 = vmax.f32 %v1135_v20, 0.0 }
 0x272   : > { %v1518_v24 = vpack.c.bf16 %v1152_v36, %v1151_v23 }
 0x274   : > { %1526 = vst [vmem:[%s2136_s10 + $0x38] sm:$0xff] %v1518_v24  }
 0x275   : > { %1608 = shalt.err (!%p1605_p5)
}
 0x276   : > { %s1646_s16 = smov 64   ;;  %s1647_s9 = smov 128  }
 0x277   : > { %s1648_s10 = smov 4  }
 0x278   : > { %1535 = dma.vmem_to_hbm [thread:$0]  (%p1717_p6), %s1198_s14, 1024, %s1200_s15, %s1186_s22, %s1646_s16, %s1647_s9, %s1648_s10  }
 0x279 PF: > { %s1214_s17 = sand.u32 1, %s1631_s18   ;;  %p1538_p7 = pnand %p1270_p9, %p1721_p8 }
 0x27a   : > { %s1215_s11 = scalar_lea.sflag [#allocation4], %s1214_s17 }
 0x27b   : > { %p1539_p10 = pneg %p1538_p7 }
 0x27d   : > { %1626 = dma.done.wait (%p1539_p10), %s1215_s11, 1024  }
 0x27e   : > { %1628 = vsyncadd (%p1539_p10), %s1215_s11, 4294966272  ;;  %p15_p11 = scmp.ge.s32.totalorder %s1702_s24, 4   ;;  %s2190_s18 = smov %s1635_s19 }
 0x27f   : > { %s2191_s19 = smov %s1639_s20  ;;  %s2192_s20 = smov %s1715_s27 }
 0x280   : > { %s2193_s21 = smov %s1702_s24  ;;  %17 = sbr.rel (!%p15_p11) target bundleno = 3 (0x3), region = 121 }
 0x285   :  { %1221 = vsyncpa [#allocation4], 1 }
 0x286   :  { %1223 = vsyncpa [#allocation4 + $0x1], 1 }

</bundles_post_ra>
